<compile_context>
chip_gen: v5e
topology: v5e:2x2
jax: 0.10.0
libtpu: 0.0.40
codegen_flags: <defaults>
</compile_context>

<pallas_src>
import jax
import jax.numpy as jnp
from jax.experimental import pallas as pl
from jax.experimental.pallas import tpu as pltpu


# ----------------------------------------------------------------------------
# Kernel: one hidden-column tile per grid step.
# ----------------------------------------------------------------------------
def ftlstm_kernel(xh_ref,       # VMEM (B, K)      bf16  [x | h_prev], resident
                  decay_ref,    # VMEM (B, 1)      f32, resident (precomputed decay)
                  c_ref,        # VMEM (B, TH)     f32, c_prev hidden tile
                  wu_ref,       # VMEM (K, 4*TH)   bf16, contiguous fused gate slab
                  b_ref,        # VMEM (1, 4*TH)   f32
                  h_out_ref,    # VMEM (B, TH)     f32
                  c_out_ref):   # VMEM (B, TH)     f32
    TH = h_out_ref.shape[-1]    # hidden tile width (multiple of 128)

    # fused gate pre-activations for this tile (bf16 in, f32 MXU accumulate)
    gates = jnp.dot(xh_ref[...], wu_ref[...],
                    preferred_element_type=jnp.float32) + b_ref[...]   # (B, 4*TH)

    # lane-aligned static slices, gate order [i, f, o, c]
    i_g = jax.nn.sigmoid(gates[:, 0 * TH:1 * TH])
    f_g = jax.nn.sigmoid(gates[:, 1 * TH:2 * TH])
    o_g = jax.nn.sigmoid(gates[:, 2 * TH:3 * TH])
    c_g = jnp.tanh(gates[:, 3 * TH:4 * TH])

    # cell / hidden update (all f32)
    decay = decay_ref[...]                       # (B, 1), broadcasts over TH
    c_prev = c_ref[...]
    c_st = jnp.tanh(c_prev)
    c_dec = c_prev - c_st + decay * c_st
    c_new = f_g * c_dec + i_g * c_g
    h_new = o_g * jnp.tanh(c_new)

    h_out_ref[...] = h_new.astype(h_out_ref.dtype)
    c_out_ref[...] = c_new.astype(c_out_ref.dtype)


# ----------------------------------------------------------------------------
# Tile selection + one-time parameter packing (call OUTSIDE the hot path).
# ----------------------------------------------------------------------------
def _choose_tile(K, H, weight_vmem_budget_bytes):
    """Pick the hidden tile width TH.

    If the full fused weight (K x 4H bf16, single buffer) fits the budget, use
    TH = H (one grid step, weights fully VMEM-resident, no streaming).
    Otherwise return the largest multiple of 128 dividing H whose
    double-buffered bf16 weight slab (2 * K * 4*TH * 2 = 16*K*TH bytes) fits.
    """
    assert H % 128 == 0, "hidden_size must be a multiple of 128"
    full_bytes = K * 4 * H * 2                      # whole fused weight, bf16
    if full_bytes <= weight_vmem_budget_bytes:
        return H
    th = (weight_vmem_budget_bytes // (16 * K)) // 128 * 128
    th = max(128, min(th, H))
    while th > 128 and H % th != 0:                 # keep an exact tiling of H
        th -= 128
    return th


def pack_params(params, weight_vmem_budget_bytes=24 * 1024 * 1024):
    """Pack the 8 gate matrices into (nt, K, 4*TH) bf16 contiguous slabs.

    Slab j holds columns [i_j | f_j | o_j | c_j], each TH wide, so each grid
    step's weight DMA is one dense contiguous burst and in-kernel gate slices
    are lane-aligned static selects.  Budget default (24 MiB for the
    double-buffered weight stream) is conservative for v5e/v6e/v7x.
    """
    I = params["Wi"].shape[0]
    H = params["Ui"].shape[0]
    K = I + H
    TH = _choose_tile(K, H, weight_vmem_budget_bytes)
    nt = H // TH

    Wg = jnp.stack([params["Wi"], params["Wf"], params["Wo"], params["Wc"]], axis=1)  # (I,4,H)
    Ug = jnp.stack([params["Ui"], params["Uf"], params["Uo"], params["Uc"]], axis=1)  # (H,4,H)
    WU = jnp.concatenate([Wg, Ug], axis=0)                                            # (K,4,H)
    WU = (WU.reshape(K, 4, nt, TH)
            .transpose(2, 0, 1, 3)                 # (nt, K, 4, TH)
            .reshape(nt, K, 4 * TH))               # per-tile contiguous slabs

    bias = jnp.stack([params["bi"], params["bf"], params["bo"], params["bc"]], axis=0)  # (4,H)
    bias = (bias.reshape(4, nt, TH)
                .transpose(1, 0, 2)
                .reshape(nt, 1, 4 * TH))

    return {
        "WU": WU.astype(jnp.bfloat16),       # bf16 weights: halve HBM weight traffic
        "bias": bias.astype(jnp.float32),
        "a": jnp.asarray(params["a"], jnp.float32),
        "b": jnp.asarray(params["b"], jnp.float32),
        "c": jnp.asarray(params["c"], jnp.float32),
        "k": jnp.asarray(params["k"], jnp.float32),
        "d": jnp.asarray(params["d"], jnp.float32),
        "n": jnp.asarray(params["n"], jnp.float32),
        "tile": TH,
        "nt": nt,
    }


# ----------------------------------------------------------------------------
# Wrapper.
# ----------------------------------------------------------------------------
def ftlstm_cell(packed, x, h_prev, c_prev, t):
    """x:(B,I), h_prev/c_prev:(B,H) f32, t:(B,) with t > 0 -> (h_new, c_new) (B,H) f32."""
    B, I = x.shape
    H = h_prev.shape[-1]
    TH = packed["tile"]
    nt = packed["nt"]
    K = I + H

    # Time decay (B,1) computed once in f32 in the wrapper (matches reference
    # exactly; requires t > 0 for the non-integer powers).
    tt = t.reshape(B, 1).astype(jnp.float32)
    T1 = 1.0 / (packed["a"] * tt ** packed["b"] + 1e-8)
    T2 = packed["k"] - packed["c"] * tt
    T3 = 1.0 / (1.0 + (tt / packed["d"]) ** packed["n"])
    decay = (T1 + T2 + T3) / 3.0

    # Concat + bf16 cast of the tiny activation block in the wrapper; avoids a
    # cross-lane concat in the kernel (I is generally not a lane multiple).
    xh = jnp.concatenate([x, h_prev], axis=-1).astype(jnp.bfloat16)    # (B, K)

    # Explicit VMEM limit with headroom: fits v7x's 64 MiB physical VMEM while
    # lifting v5e/v6e's 16/32 MiB default scoped limits when tiles are large.
    wu_tile_bytes = K * 4 * TH * 2
    vmem_limit = int(min(48 * 1024 * 1024,
                         max(32 * 1024 * 1024, 4 * wu_tile_bytes + (8 << 20))))

    return pl.pallas_call(
        ftlstm_kernel,
        out_shape=(jax.ShapeDtypeStruct((B, H), jnp.float32),
                   jax.ShapeDtypeStruct((B, H), jnp.float32)),
        grid=(nt,),
        in_specs=[
            pl.BlockSpec((B, K), lambda j: (0, 0)),               # xh (resident)
            pl.BlockSpec((B, 1), lambda j: (0, 0)),               # decay (resident)
            pl.BlockSpec((B, TH), lambda j: (0, j)),              # c_prev tile
            pl.BlockSpec((None, K, 4 * TH), lambda j: (j, 0, 0)),  # WU slab (contiguous burst)
            pl.BlockSpec((None, 1, 4 * TH), lambda j: (j, 0, 0)),  # bias slab
        ],
        out_specs=(pl.BlockSpec((B, TH), lambda j: (0, j)),       # h_new
                   pl.BlockSpec((B, TH), lambda j: (0, j))),      # c_new
        compiler_params=pltpu.CompilerParams(
            dimension_semantics=("parallel",),                    # 2 TCs on v7x
            vmem_limit_bytes=vmem_limit),
    )(xh, decay, c_prev, packed["WU"], packed["bias"])


# ----------------------------------------------------------------------------
# Pure-JAX reference mirroring the PyTorch forward (f32, highest precision).
# ----------------------------------------------------------------------------
def ftlstm_ref(params, x, h_prev, c_prev, t):
    hi = jax.lax.Precision.HIGHEST
    dot = lambda a, b: jnp.dot(a, b, precision=hi)
    tt = t.reshape(-1, 1)
    T1 = 1.0 / (params["a"] * tt ** params["b"] + 1e-8)
    T2 = params["k"] - params["c"] * tt
    T3 = 1.0 / (1.0 + (tt / params["d"]) ** params["n"])
    decay = (T1 + T2 + T3) / 3.0
    c_st = jnp.tanh(c_prev)
    c_p = c_prev - c_st + decay * c_st
    i = jax.nn.sigmoid(dot(x, params["Wi"]) + dot(h_prev, params["Ui"]) + params["bi"])
    f = jax.nn.sigmoid(dot(x, params["Wf"]) + dot(h_prev, params["Uf"]) + params["bf"])
    o = jax.nn.sigmoid(dot(x, params["Wo"]) + dot(h_prev, params["Uo"]) + params["bo"])
    c = jnp.tanh(dot(x, params["Wc"]) + dot(h_prev, params["Uc"]) + params["bc"])
    c_new = f * c_p + i * c
    h_new = o * jnp.tanh(c_new)
    return h_new, c_new


def init_params(key, input_size, hidden_size, initializer_range=0.02):
    ks = jax.random.split(key, 8)
    nrm = lambda k, shp: (initializer_range *
                          jax.random.normal(k, shp, dtype=jnp.float32))
    return {
        "Wi": nrm(ks[0], (input_size, hidden_size)),
        "Ui": nrm(ks[1], (hidden_size, hidden_size)),
        "bi": jnp.zeros((hidden_size,), jnp.float32),
        "Wf": nrm(ks[2], (input_size, hidden_size)),
        "Uf": nrm(ks[3], (hidden_size, hidden_size)),
        "bf": jnp.zeros((hidden_size,), jnp.float32),
        "Wo": nrm(ks[4], (input_size, hidden_size)),
        "Uo": nrm(ks[5], (hidden_size, hidden_size)),
        "bo": jnp.zeros((hidden_size,), jnp.float32),
        "Wc": nrm(ks[6], (input_size, hidden_size)),
        "Uc": nrm(ks[7], (hidden_size, hidden_size)),
        "bc": jnp.zeros((hidden_size,), jnp.float32),
        "a": jnp.float32(1.0),
        "b": jnp.float32(1.0),
        "c": jnp.float32(0.02),
        "k": jnp.float32(2.9),
        "d": jnp.float32(4.5),
        "n": jnp.float32(2.5),
    }


if __name__ == "__main__":
    # Small shapes; H is a multiple of 128 so gate slabs / tiles stay lane-aligned.
    B, I, H = 8, 64, 256

    key = jax.random.PRNGKey(0)
    kp, kx, kh, kc, kt = jax.random.split(key, 5)

    params = init_params(kp, I, H)
    packed = pack_params(params)     # one-time packing + tile selection, outside hot path
    # For these shapes the full fused weight (640 KiB bf16) fits VMEM -> nt == 1.
    assert packed["nt"] * packed["tile"] == H

    x = jax.random.normal(kx, (B, I), dtype=jnp.float32)
    h_prev = jax.random.normal(kh, (B, H), dtype=jnp.float32)
    c_prev = jax.random.normal(kc, (B, H), dtype=jnp.float32)
    t = jax.random.uniform(kt, (B,), minval=0.1, maxval=10.0, dtype=jnp.float32)

    h_new, c_new = jax.block_until_ready(ftlstm_cell(packed, x, h_prev, c_prev, t))

    # Tight check: reference using the same bf16-rounded matmul inputs as the kernel.
    rt = lambda v: v.astype(jnp.bfloat16).astype(jnp.float32)
    params_rt = dict(params)
    for name in ("Wi", "Ui", "Wf", "Uf", "Wo", "Uo", "Wc", "Uc"):
        params_rt[name] = rt(params[name])
    h_t, c_t = ftlstm_ref(params_rt, rt(x), rt(h_prev), c_prev, t)
    assert jnp.allclose(h_new, h_t, atol=1e-3, rtol=1e-3)
    assert jnp.allclose(c_new, c_t, atol=1e-3, rtol=1e-3)

    # Loose check vs. the full-f32 module semantics (only bf16 rounding of the
    # matmul inputs differs).
    h_r, c_r = ftlstm_ref(params, x, h_prev, c_prev, t)
    assert jnp.allclose(h_new, h_r, atol=3e-2, rtol=0)
    assert jnp.allclose(c_new, c_r, atol=3e-2, rtol=0)

    print("KERNEL_OK")
</pallas_src>

<mosaic_0001>
module attributes {stable_mosaic.version = 11 : i64} {
  func.func @ftlstm_kernel(%arg0: i32, %arg1: memref<8x320xbf16, #tpu.memory_space<vmem>>, %arg2: memref<8x1xf32, #tpu.memory_space<vmem>>, %arg3: memref<8x256xf32, #tpu.memory_space<vmem>>, %arg4: memref<1x320x1024xbf16, #tpu.memory_space<vmem>>, %arg5: memref<1x1x1024xf32, #tpu.memory_space<vmem>>, %arg6: memref<8x256xf32, #tpu.memory_space<vmem>>, %arg7: memref<8x256xf32, #tpu.memory_space<vmem>>) attributes {dimension_semantics = [#tpu.dimension_semantics<parallel>], iteration_bounds = array<i64: 1>, scalar_prefetch = 0 : i64, scratch_operands = 0 : i64, tpu.core_type = #tpu.core_type<tc>, window_params = [{pipeline_mode = #tpu.pipeline_mode<synchronous>, transform_indices = @transform_0, window_bounds = array<i64: 8, 320>}, {pipeline_mode = #tpu.pipeline_mode<synchronous>, transform_indices = @transform_1, window_bounds = array<i64: 8, 1>}, {transform_indices = @transform_2, window_bounds = array<i64: 8, 256>}, {transform_indices = @transform_3, window_bounds = array<i64: 1, 320, 1024>}, {transform_indices = @transform_4, window_bounds = array<i64: 1, 1, 1024>}, {transform_indices = @transform_5, window_bounds = array<i64: 8, 256>}, {transform_indices = @transform_6, window_bounds = array<i64: 8, 256>}]} {
    %c0 = arith.constant 0 : index
    %c0_0 = arith.constant 0 : index
    %0 = vector.load %arg1[%c0, %c0_0] : memref<8x320xbf16, #tpu.memory_space<vmem>>, vector<8x320xbf16>
    %c0_1 = arith.constant 0 : index
    %c0_2 = arith.constant 0 : index
    %c0_3 = arith.constant 0 : index
    %1 = vector.load %arg4[%c0_1, %c0_2, %c0_3] : memref<1x320x1024xbf16, #tpu.memory_space<vmem>>, vector<1x320x1024xbf16>
    %2 = vector.shape_cast %1 : vector<1x320x1024xbf16> to vector<320x1024xbf16>
    %cst = arith.constant dense<0.000000e+00> : vector<8x1024xf32>
    %3 = tpu.matmul %0, %2, %cst {dimension_numbers = #tpu.dot_dimension_numbers<[1], [0], [0], [1], [0, 0, 1, 1], [], []>} : vector<8x320xbf16>, vector<320x1024xbf16>, vector<8x1024xf32> -> vector<8x1024xf32>
    %c0_4 = arith.constant 0 : index
    %c0_5 = arith.constant 0 : index
    %c0_6 = arith.constant 0 : index
    %4 = vector.load %arg5[%c0_4, %c0_5, %c0_6] : memref<1x1x1024xf32, #tpu.memory_space<vmem>>, vector<1x1x1024xf32>
    %5 = vector.shape_cast %4 : vector<1x1x1024xf32> to vector<1x1024xf32>
    %6 = vector.broadcast %5 : vector<1x1024xf32> to vector<8x1024xf32>
    %7 = arith.addf %3, %6 : vector<8x1024xf32>
    %8 = vector.extract_strided_slice %7 {offsets = [0, 0], sizes = [8, 256], strides = [1, 1]} : vector<8x1024xf32> to vector<8x256xf32>
    %9 = arith.negf %8 : vector<8x256xf32>
    %10 = math.exp %9 : vector<8x256xf32>
    %cst_7 = arith.constant 1.000000e+00 : f32
    %11 = vector.broadcast %cst_7 : f32 to vector<8x256xf32>
    %12 = arith.addf %11, %10 : vector<8x256xf32>
    %13 = arith.divf %11, %12 : vector<8x256xf32>
    %14 = vector.extract_strided_slice %7 {offsets = [0, 256], sizes = [8, 256], strides = [1, 1]} : vector<8x1024xf32> to vector<8x256xf32>
    %15 = arith.negf %14 : vector<8x256xf32>
    %16 = math.exp %15 : vector<8x256xf32>
    %cst_8 = arith.constant 1.000000e+00 : f32
    %17 = vector.broadcast %cst_8 : f32 to vector<8x256xf32>
    %18 = arith.addf %17, %16 : vector<8x256xf32>
    %19 = arith.divf %17, %18 : vector<8x256xf32>
    %20 = vector.extract_strided_slice %7 {offsets = [0, 512], sizes = [8, 256], strides = [1, 1]} : vector<8x1024xf32> to vector<8x256xf32>
    %21 = arith.negf %20 : vector<8x256xf32>
    %22 = math.exp %21 : vector<8x256xf32>
    %cst_9 = arith.constant 1.000000e+00 : f32
    %23 = vector.broadcast %cst_9 : f32 to vector<8x256xf32>
    %24 = arith.addf %23, %22 : vector<8x256xf32>
    %25 = arith.divf %23, %24 : vector<8x256xf32>
    %26 = vector.extract_strided_slice %7 {offsets = [0, 768], sizes = [8, 256], strides = [1, 1]} : vector<8x1024xf32> to vector<8x256xf32>
    %27 = math.tanh %26 : vector<8x256xf32>
    %c0_10 = arith.constant 0 : index
    %c0_11 = arith.constant 0 : index
    %28 = vector.load %arg2[%c0_10, %c0_11] : memref<8x1xf32, #tpu.memory_space<vmem>>, vector<8x1xf32>
    %c0_12 = arith.constant 0 : index
    %c0_13 = arith.constant 0 : index
    %29 = vector.load %arg3[%c0_12, %c0_13] : memref<8x256xf32, #tpu.memory_space<vmem>>, vector<8x256xf32>
    %30 = math.tanh %29 : vector<8x256xf32>
    %31 = arith.subf %29, %30 : vector<8x256xf32>
    %32 = vector.broadcast %28 : vector<8x1xf32> to vector<8x256xf32>
    %33 = arith.mulf %32, %30 : vector<8x256xf32>
    %34 = arith.addf %31, %33 : vector<8x256xf32>
    %35 = arith.mulf %19, %34 : vector<8x256xf32>
    %36 = arith.mulf %13, %27 : vector<8x256xf32>
    %37 = arith.addf %35, %36 : vector<8x256xf32>
    %38 = math.tanh %37 : vector<8x256xf32>
    %39 = arith.mulf %25, %38 : vector<8x256xf32>
    %c0_14 = arith.constant 0 : index
    %c0_15 = arith.constant 0 : index
    %40 = vector.load %arg6[%c0_14, %c0_15] : memref<8x256xf32, #tpu.memory_space<vmem>>, vector<8x256xf32>
    tpu.vector_store %arg6[%c0_14, %c0_15], %39 {strides = array<i32>} : memref<8x256xf32, #tpu.memory_space<vmem>>, vector<8x256xf32>,
    %c0_16 = arith.constant 0 : index
    %c0_17 = arith.constant 0 : index
    %41 = vector.load %arg7[%c0_16, %c0_17] : memref<8x256xf32, #tpu.memory_space<vmem>>, vector<8x256xf32>
    tpu.vector_store %arg7[%c0_16, %c0_17], %37 {strides = array<i32>} : memref<8x256xf32, #tpu.memory_space<vmem>>, vector<8x256xf32>,
    return
  }
  func.func @transform_0(%arg0: i32) -> (i32, i32) {
    %c0_i32 = arith.constant 0 : i32
    %c0_i32_0 = arith.constant 0 : i32
    %c0_i32_1 = arith.constant 0 : i32
    return %c0_i32, %c0_i32_0 : i32, i32
  }
  func.func @transform_1(%arg0: i32) -> (i32, i32) {
    %c0_i32 = arith.constant 0 : i32
    %c0_i32_0 = arith.constant 0 : i32
    %c0_i32_1 = arith.constant 0 : i32
    return %c0_i32, %c0_i32_0 : i32, i32
  }
  func.func @transform_2(%arg0: i32) -> (i32, i32) {
    %c0_i32 = arith.constant 0 : i32
    %c0_i32_0 = arith.constant 0 : i32
    return %c0_i32, %arg0 : i32, i32
  }
  func.func @transform_3(%arg0: i32) -> (i32, i32, i32) {
    %c0_i32 = arith.constant 0 : i32
    %c0_i32_0 = arith.constant 0 : i32
    %c0_i32_1 = arith.constant 0 : i32
    return %arg0, %c0_i32, %c0_i32_0 : i32, i32, i32
  }
  func.func @transform_4(%arg0: i32) -> (i32, i32, i32) {
    %c0_i32 = arith.constant 0 : i32
    %c0_i32_0 = arith.constant 0 : i32
    %c0_i32_1 = arith.constant 0 : i32
    return %arg0, %c0_i32, %c0_i32_0 : i32, i32, i32
  }
  func.func @transform_5(%arg0: i32) -> (i32, i32) {
    %c0_i32 = arith.constant 0 : i32
    %c0_i32_0 = arith.constant 0 : i32
    return %c0_i32, %arg0 : i32, i32
  }
  func.func @transform_6(%arg0: i32) -> (i32, i32) {
    %c0_i32 = arith.constant 0 : i32
    %c0_i32_0 = arith.constant 0 : i32
    return %c0_i32, %arg0 : i32, i32
  }
}

</mosaic_0001>

<bundles_post_ra>
// kernel: tpu_custom_call.1
= control target key start
LH: loop header
LB: loop body
LE: loop exit
PB: predicated region body
PF: predicated region fallthrough
CT: control target
= control target key end

     0   :  { %12 = vsyncpa [#allocation3], 0  ;;  %s2785_s0 = inlined_call_operand.hbm [shape: bf16[8,320], index: 0, kind: input, shape index: {}]   ;;  %s2786_s1 = inlined_call_operand.vmem [shape: f32[8,1], index: 1, kind: input, shape index: {}]   ;;  %s2787_s2 = inlined_call_operand.hbm [shape: f32[8,256], index: 2, kind: input, shape index: {}]   ;;  %s2788_s3 = inlined_call_operand.hbm [shape: bf16[1,320,1024], index: 3, kind: input, shape index: {}]   ;;  %s2789_s4 = inlined_call_operand.vmem [shape: f32[1,1,1024], index: 4, kind: input, shape index: {}]   ;;  %s2790_s5 = inlined_call_operand.hbm [shape: f32[8,256], index: 5, kind: output, shape index: {0}]   ;;  %s2791_s6 = inlined_call_operand.hbm [shape: f32[8,256], index: 6, kind: output, shape index: {1}]  }
   0x1   :  { %13 = vsyncpa [#allocation6], 0 }
   0x2   :  { %14 = vsyncpa [#allocation4], 0  ;;  %s34_s23 = sshll.u32 %s2787_s2, 4  ;;  %s35_s23 = int_to_ptr.hbm [resolvable:$true] %s34_s23 }
   0x3   :  { %15 = vsyncpa [#allocation10], 0  ;;  %s2541_s24 = smov [#allocation5]   ;;  %s21_s28 = sshll.u32 %s2785_s0, 4  ;;  %s22_s28 = int_to_ptr.hbm [resolvable:$true] %s21_s28 }
   0x4   :  { %s36_s25 = sshll.u32 %s2541_s24, 4  ;;  %s2542_s29 = smov [#allocation2]   ;;  %s37_s25 = int_to_ptr.vmem [resolvable:$true] %s36_s25 }
   0x5   :  { %39 = dma.hbm_to_vmem [thread:$0]  %s35_s23, 256, %s37_s25, [#allocation6]  }
   0x6   :  { %s23_s30 = sshll.u32 %s2542_s29, 4  ;;  %s44_s9 = sshll.u32 %s2788_s3, 4  ;;  %s24_s30 = int_to_ptr.vmem [resolvable:$true] %s23_s30  ;;  %s45_s9 = int_to_ptr.hbm [resolvable:$true] %s44_s9 }
   0x7   :  { %26 = dma.hbm_to_vmem [thread:$0]  %s22_s28, 192, %s24_s30, [#allocation3]  }
   0x8   :  { %s2543_s2 = smov [#allocation7]   ;;  %s2544_s11 = smov 512  }
   0x9   :  { %s46_s10 = sshll.u32 %s2543_s2, 4  ;;  %s2545_s12 = smov 32   ;;  %s47_s10 = int_to_ptr.vmem [resolvable:$true] %s46_s10 }
   0xa   :  { %52 = dma.hbm_to_vmem [thread:$0]  %s45_s9, 20480, %s47_s10, [#allocation6], %s2544_s11, %s2544_s11, %s2545_s12  }
   0xb   :  { %2533 = dma.done.wait [#allocation3], 192  }
   0xc   :  { %2534 = vsyncadd [#allocation3], 4294967104 }
   0xd   :  { %2535 = dma.done.wait [#allocation6], 20736  }
   0xe   :  { %2536 = vsyncadd [#allocation6], 4294946560  ;;  %v1780_v0 = vld [vmem:[#allocation7 + $0x1c0] sm:$0xf]  ;;  %v2264_v9 = vld [vmem:[#allocation7 + $0x1c4] sm:$0xf] }
   0xf   :  { %v2268_v1 = vld [vmem:[#allocation7 + $0x1dc] sm:$0xf0]  ;;  %v1782_v10 = vld [vmem:[#allocation7 + $0x1e0] sm:$0xf0]  ;;  %vm1058_vm0 = vcmask 523264   ;;  %s1538_s17 = sshll.u32 %s2791_s6, 4  ;;  %s1539_s17 = int_to_ptr.hbm [resolvable:$true] %s1538_s17 }
  0x10   :  { %v2036_v2 = vld [vmem:[#allocation7 + $0x3c0] sm:$0xf]  ;;  %v1781_v3 = vor.u32 %v2268_v1, %v1780_v0  ;;  %v1785_v12 = vor.u32 %v2264_v9, %v1782_v10  ;;  %v2256_v20 = vld [vmem:[#allocation7 + $0x184] sm:$0xf]  ;;  %s2548_s6 = smov [#allocation8]   ;;  %s1527_s21 = sshll.u32 %s2790_s5, 4  ;;  %s1528_s21 = int_to_ptr.hbm [resolvable:$true] %s1527_s21 }
  0x11   :  { %v2332_v4 = vld [vmem:[#allocation7 + $0x3dc] sm:$0xf0]  ;;  %v1750_v22 = vld [vmem:[#allocation7 + $0x1a0] sm:$0xf0]  ;;  %s1525_s18 = sshll.u32 %s2548_s6, 4  ;;  %s1526_s18 = int_to_ptr.vmem [resolvable:$true] %s1525_s18 }
  0x12   :  { %v2164_v5 = vld [vmem:[#allocation7 + $0x4c0] sm:$0xf]  ;;  %v2037_v7 = vor.u32 %v2332_v4, %v2036_v2  ;;  %1062 = vmatpush.bf16.msra.mxu0 %v1781_v3  ;;  %1101 = vmatpush.bf16.msra.mxu3 %v1785_v12  ;;  %v1753_v25 = vor.u32 %v2256_v20, %v1750_v22  ;;  %v2248_v31 = vld [vmem:[#allocation7 + $0x144] sm:$0xf] }
  0x13   :  { %v2364_v6 = vld [vmem:[#allocation7 + $0x4dc] sm:$0xf0]  ;;  %v1718_v32 = vld [vmem:[#allocation7 + $0x160] sm:$0xf0] }
  0x14   :  { %v2165_v8 = vor.u32 %v2364_v6, %v2164_v5  ;;  %v1748_v11 = vld [vmem:[#allocation7 + $0x180] sm:$0xf]  ;;  %1075 = vmatpush.bf16.msra.mxu1 %v2037_v7  ;;  %v1721_v38 = vor.u32 %v2248_v31, %v1718_v32  ;;  %v2240_v42 = vld [vmem:[#allocation7 + $0x104] sm:$0xf] }
  0x15   :  { %v2260_v13 = vld [vmem:[#allocation7 + $0x19c] sm:$0xf0]  ;;  %v1686_v43 = vld [vmem:[#allocation7 + $0x120] sm:$0xf0] }
  0x16   :  { %v2004_v14 = vld [vmem:[#allocation7 + $0x380] sm:$0xf]  ;;  %1092 = vmatpush.bf16.msra.mxu2 %v2165_v8  ;;  %v1749_v16 = vor.u32 %v2260_v13, %v1748_v11  ;;  %1102 = vmatpush.bf16.msra.mxu3 %v1753_v25  ;;  %v2328_v44 = vld [vmem:[#allocation7 + $0x3c4] sm:$0xf]  ;;  %v1689_v51 = vor.u32 %v2240_v42, %v1686_v43 }
  0x17   :  { %v2324_v15 = vld [vmem:[#allocation7 + $0x39c] sm:$0xf0]  ;;  %v2038_v46 = vld [vmem:[#allocation7 + $0x3e0] sm:$0xf0] }
  0x18   :  { %v2005_v17 = vor.u32 %v2324_v15, %v2004_v14  ;;  %v2132_v18 = vld [vmem:[#allocation7 + $0x480] sm:$0xf]  ;;  %1063 = vmatpush.bf16.msra.mxu0 %v1749_v16  ;;  %v2041_v52 = vor.u32 %v2328_v44, %v2038_v46  ;;  %v2232_v55 = vld [vmem:[#allocation7 + $0xc4] sm:$0xf] }
  0x19   :  { %v2356_v19 = vld [vmem:[#allocation7 + $0x49c] sm:$0xf0]  ;;  %v1654_v56 = vld [vmem:[#allocation7 + $0xe0] sm:$0xf0] }
  0x1a   :  { %v2133_v21 = vor.u32 %v2356_v19, %v2132_v18  ;;  %v1716_v23 = vld [vmem:[#allocation7 + $0x140] sm:$0xf]  ;;  %1076 = vmatpush.bf16.msra.mxu1 %v2005_v17  ;;  %1103 = vmatpush.bf16.msra.mxu3 %v1721_v38  ;;  %v2320_v57 = vld [vmem:[#allocation7 + $0x384] sm:$0xf]  ;;  %v1657_v63 = vor.u32 %v2232_v55, %v1654_v56  ;;  %v69_v17 = vld [vmem:[#allocation2 + $0x8] sm:$0xf] }
  0x1b   :  { %v2252_v24 = vld [vmem:[#allocation7 + $0x15c] sm:$0xf0]  ;;  %v2006_v58 = vld [vmem:[#allocation7 + $0x3a0] sm:$0xf0] }
  0x1c   :  { %v1972_v26 = vld [vmem:[#allocation7 + $0x340] sm:$0xf]  ;;  %v1717_v29 = vor.u32 %v2252_v24, %v1716_v23  ;;  %1093 = vmatpush.bf16.msra.mxu2 %v2133_v21  ;;  %v2009_v0 = vor.u32 %v2320_v57, %v2006_v58  ;;  %v2224_v3 = vld [vmem:[#allocation7 + $0x84] sm:$0xf]  ;;  %v252_v21 = vunpack.c.l.b16 %v69_v17  ;;  %v1756_v58 = vld [vmem:[#allocation7 + $0x188] sm:$0xf] }
  0x1d   :  { %v2316_v27 = vld [vmem:[#allocation7 + $0x35c] sm:$0xf0]  ;;  %v1622_v4 = vld [vmem:[#allocation7 + $0xa0] sm:$0xf0] }
  0x1e   :  { %v2100_v28 = vld [vmem:[#allocation7 + $0x440] sm:$0xf]  ;;  %v1973_v33 = vor.u32 %v2316_v27, %v1972_v26  ;;  %1064 = vmatpush.bf16.msra.mxu0 %v1717_v29  ;;  %1104 = vmatpush.bf16.msra.mxu3 %v1689_v51  ;;  %v2312_v5 = vld [vmem:[#allocation7 + $0x344] sm:$0xf]  ;;  %v1625_v13 = vor.u32 %v2224_v3, %v1622_v4 }
  0x1f   :  { %v2348_v30 = vld [vmem:[#allocation7 + $0x45c] sm:$0xf0]  ;;  %v1974_v6 = vld [vmem:[#allocation7 + $0x360] sm:$0xf0] }
  0x20   :  { %v2101_v34 = vor.u32 %v2348_v30, %v2100_v28  ;;  %v1684_v35 = vld [vmem:[#allocation7 + $0x100] sm:$0xf]  ;;  %1077 = vmatpush.bf16.msra.mxu1 %v1973_v33  ;;  %v1977_v14 = vor.u32 %v2312_v5, %v1974_v6  ;;  %v2216_v15 = vld [vmem:[#allocation7 + $0x44] sm:$0xf]  ;;  %v2593_v28 = vpack.c.b16 %v252_v21, %v252_v21  ;;  %v2172_v33 = vld [vmem:[#allocation7 + $0x4c8] sm:$0xf] }
  0x21   :  { %v2244_v36 = vld [vmem:[#allocation7 + $0x11c] sm:$0xf0]  ;;  %v1590_v16 = vld [vmem:[#allocation7 + $0x60] sm:$0xf0]  ;;  %v1724_v6 = vld [vmem:[#allocation7 + $0x148] sm:$0xf] }
  0x22   :  { %v1940_v37 = vld [vmem:[#allocation7 + $0x300] sm:$0xf]  ;;  %v1685_v45 = vor.u32 %v2244_v36, %v1684_v35  ;;  %1094 = vmatpush.bf16.msra.mxu2 %v2101_v34  ;;  %1105 = vmatpush.bf16.msra.mxu3 %v1657_v63  ;;  %v2304_v18 = vld [vmem:[#allocation7 + $0x304] sm:$0xf]  ;;  %v1593_v30 = vor.u32 %v2216_v15, %v1590_v16  ;;  %v2365_v34 = vld [vmem:[#allocation7 + $0x4e4] sm:$0xf0] }
  0x23   :  { %v2308_v39 = vld [vmem:[#allocation7 + $0x31c] sm:$0xf0]  ;;  %v1942_v19 = vld [vmem:[#allocation7 + $0x320] sm:$0xf0]  ;;  %v2349_v63 = vld [vmem:[#allocation7 + $0x464] sm:$0xf0] }
  0x24   :  { %v2068_v40 = vld [vmem:[#allocation7 + $0x400] sm:$0xf]  ;;  %v1941_v47 = vor.u32 %v2308_v39, %v1940_v37  ;;  %1065 = vmatpush.bf16.msra.mxu0 %v1685_v45  ;;  %v2208_v27 = vld [vmem:[#allocation7 + $0x4] sm:$0xf]  ;;  %v1945_v31 = vor.u32 %v2304_v18, %v1942_v19  ;;  %v2173_v45 = vor.u32 %v2365_v34, %v2172_v33  ;;  %v2329_v18 = vld [vmem:[#allocation7 + $0x3cc] sm:$0xf] }
  0x25   :  { %v2340_v41 = vld [vmem:[#allocation7 + $0x41c] sm:$0xf0]  ;;  %v68_v29 = vld [vmem:[#allocation2] sm:$0xff]  ;;  %v2046_v19 = vld [vmem:[#allocation7 + $0x3e8] sm:$0xf0] }
  0x26   :  { %v2069_v48 = vor.u32 %v2340_v41, %v2068_v40  ;;  %v1652_v49 = vld [vmem:[#allocation7 + $0xc0] sm:$0xf]  ;;  %1078 = vmatpush.bf16.msra.mxu1 %v1941_v47  ;;  %1106 = vmatpush.bf16.msra.mxu3 %v1625_v13  ;;  %v1558_v32 = vld [vmem:[#allocation7 + $0x20] sm:$0xf0]  ;;  %v1788_v40 = vld [vmem:[#allocation7 + $0x1c8] sm:$0xf]  ;;  %v250_v42 = vunpack.c.l.b16 %v68_v29  ;;  %v251_v43 = vunpack.c.h.b16 %v68_v29  ;;  %v2049_v29 = vor.u32 %v2329_v18, %v2046_v19 }
  0x27   :  { %v2236_v50 = vld [vmem:[#allocation7 + $0xdc] sm:$0xf0]  ;;  %v2296_v35 = vld [vmem:[#allocation7 + $0x2c4] sm:$0xf]  ;;  %v2269_v41 = vld [vmem:[#allocation7 + $0x1e4] sm:$0xf0]  ;;  %v1561_v46 = vor.u32 %v2208_v27, %v1558_v32 }
  0x28   :  { %v1908_v53 = vld [vmem:[#allocation7 + $0x2c0] sm:$0xf]  ;;  %v1653_v59 = vor.u32 %v2236_v50, %v1652_v49  ;;  %1095 = vmatpush.bf16.msra.mxu2 %v2069_v48  ;;  %v1910_v36 = vld [vmem:[#allocation7 + $0x2e0] sm:$0xf0]  ;;  %v2140_v48 = vld [vmem:[#allocation7 + $0x488] sm:$0xf]  ;;  %v1789_v51 = vor.u32 %v2269_v41, %v1788_v40  ;;  %v2597_v55 = vpack.c.b16 %v250_v42, %v250_v42  ;;  %v2599_v56 = vpack.c.b16 %v251_v43, %v251_v43 }
  0x29   :  { %v2300_v54 = vld [vmem:[#allocation7 + $0x2dc] sm:$0xf0]  ;;  %v2360_v37 = vld [vmem:[#allocation7 + $0x4c4] sm:$0xf]  ;;  %v1913_v47 = vor.u32 %v2296_v35, %v1910_v36  ;;  %v2357_v49 = vld [vmem:[#allocation7 + $0x4a4] sm:$0xf0] }
  0x2a   :  { %v1909_v60 = vor.u32 %v2300_v54, %v1908_v53  ;;  %v1620_v61 = vld [vmem:[#allocation7 + $0x80] sm:$0xf]  ;;  %1066 = vmatpush.bf16.msra.mxu0 %v1653_v59  ;;  %v2166_v39 = vld [vmem:[#allocation7 + $0x4e0] sm:$0xf0]  ;;  %1107 = vmatpush.bf16.msra.mxu3 %v1593_v30  ;;  %v2261_v59 = vld [vmem:[#allocation7 + $0x1a4] sm:$0xf0] }
  0x2b   :  { %v2228_v62 = vld [vmem:[#allocation7 + $0x9c] sm:$0xf0]  ;;  %2194 = vmatmul.msk.bf16.vlgmr.msra.gmra.mxu2 %vm1058_vm0, %v2593_v28  ;;  %v2169_v50 = vor.u32 %v2360_v37, %v2166_v39  ;;  %v1878_v53 = vld [vmem:[#allocation7 + $0x2a0] sm:$0xf0]  ;;  %v2076_v13 = vld [vmem:[#allocation7 + $0x408] sm:$0xf] }
  0x2c   :  { %1114 = vmatpush.bf16.msrb.mxu2 %v2041_v52  ;;  %v1876_v1 = vld [vmem:[#allocation7 + $0x280] sm:$0xf]  ;;  %v1621_v7 = vor.u32 %v2228_v62, %v1620_v61  ;;  %1079 = vmatpush.bf16.msra.mxu1 %v1909_v60  ;;  %v2288_v52 = vld [vmem:[#allocation7 + $0x284] sm:$0xf]  ;;  %v2141_v60 = vor.u32 %v2357_v49, %v2140_v48  ;;  %v2108_v62 = vld [vmem:[#allocation7 + $0x448] sm:$0xf] }
  0x2d   :  { %v2292_v2 = vld [vmem:[#allocation7 + $0x29c] sm:$0xf0]  ;;  %v2352_v54 = vld [vmem:[#allocation7 + $0x484] sm:$0xf]  ;;  %v1881_v61 = vor.u32 %v2288_v52, %v1878_v53  ;;  %v2245_v21 = vld [vmem:[#allocation7 + $0x124] sm:$0xf0] }
  0x2e   :  { %v1588_v8 = vld [vmem:[#allocation7 + $0x40] sm:$0xf]  ;;  %v1877_v9 = vor.u32 %v2292_v2, %v1876_v1  ;;  %1067 = vmatpush.bf16.msra.mxu0 %v1621_v7  ;;  %v2134_v57 = vld [vmem:[#allocation7 + $0x4a0] sm:$0xf0]  ;;  %1108 = vmatpush.bf16.msra.mxu3 %v1561_v46  ;;  %v1757_v1 = vor.u32 %v2261_v59, %v1756_v58  ;;  %v2253_v7 = vld [vmem:[#allocation7 + $0x164] sm:$0xf0] }
  0x2f   :  { %v2220_v10 = vld [vmem:[#allocation7 + $0x5c] sm:$0xf0]  ;;  %v2280_v2 = vld [vmem:[#allocation7 + $0x244] sm:$0xf]  ;;  %v1725_v16 = vor.u32 %v2253_v7, %v1724_v6  ;;  %v2321_v32 = vld [vmem:[#allocation7 + $0x38c] sm:$0xf] }
  0x30   :  { %v1844_v11 = vld [vmem:[#allocation7 + $0x240] sm:$0xf]  ;;  %1115 = vmatpush.bf16.msrb.mxu2 %v2009_v0  ;;  %v1589_v22 = vor.u32 %v2220_v10, %v1588_v8  ;;  %1080 = vmatpush.bf16.msra.mxu1 %v1877_v9  ;;  %v2137_v0 = vor.u32 %v2352_v54, %v2134_v57  ;;  %v1846_v3 = vld [vmem:[#allocation7 + $0x260] sm:$0xf0]  ;;  %v2109_v8 = vor.u32 %v2349_v63, %v2108_v62  ;;  %v2014_v33 = vld [vmem:[#allocation7 + $0x3a8] sm:$0xf0] }
  0x31   :  { %v2284_v12 = vld [vmem:[#allocation7 + $0x25c] sm:$0xf0]  ;;  %v2344_v4 = vld [vmem:[#allocation7 + $0x444] sm:$0xf]  ;;  %1109 = vmatmul.bf16.vlgmr.msra.gmra.mxu3 %v2597_v55  ;;  %v1660_v36 = vld [vmem:[#allocation7 + $0xc8] sm:$0xf]  ;;  %v2017_v42 = vor.u32 %v2321_v32, %v2014_v33 }
  0x32   :  { %v1556_v20 = vld [vmem:[#allocation7] sm:$0xf]  ;;  %v1845_v25 = vor.u32 %v2284_v12, %v1844_v11  ;;  %1068 = vmatpush.bf16.msra.mxu0 %v1589_v22  ;;  %1131 = vmatpush.bf16.msrb.mxu3 %v2169_v50  ;;  %v2102_v5 = vld [vmem:[#allocation7 + $0x460] sm:$0xf0]  ;;  %v1849_v11 = vor.u32 %v2280_v2, %v1846_v3  ;;  %v2044_v22 = vld [vmem:[#allocation7 + $0x3c8] sm:$0xf] }
  0x33   :  { %v2212_v23 = vld [vmem:[#allocation7 + $0x1c] sm:$0xf0]  ;;  %v2272_v9 = vld [vmem:[#allocation7 + $0x204] sm:$0xf]  ;;  %v2105_v15 = vor.u32 %v2344_v4, %v2102_v5  ;;  %v2237_v37 = vld [vmem:[#allocation7 + $0xe4] sm:$0xf0] }
  0x34   :  { %v1812_v24 = vld [vmem:[#allocation7 + $0x200] sm:$0xf]  ;;  %1116 = vmatpush.bf16.msrb.mxu2 %v1977_v14  ;;  %v1557_v38 = vor.u32 %v2212_v23, %v1556_v20  ;;  %1081 = vmatpush.bf16.msra.mxu1 %v1845_v25  ;;  %v1814_v10 = vld [vmem:[#allocation7 + $0x220] sm:$0xf0]  ;;  %v2341_v14 = vld [vmem:[#allocation7 + $0x424] sm:$0xf0]  ;;  %v1661_v43 = vor.u32 %v2237_v37, %v1660_v36 }
  0x35   :  { %v2276_v26 = vld [vmem:[#allocation7 + $0x21c] sm:$0xf0]  ;;  %v2336_v12 = vld [vmem:[#allocation7 + $0x404] sm:$0xf]  ;;  %v1692_v20 = vld [vmem:[#allocation7 + $0x108] sm:$0xf]  ;;  %v2077_v23 = vor.u32 %v2341_v14, %v2076_v13  ;;  %v1817_v27 = vor.u32 %v2272_v9, %v1814_v10 }
  0x36   :  { %v1813_v44 = vor.u32 %v2276_v26, %v1812_v24  ;;  %1069 = vmatpush.bf16.msra.mxu0 %v1557_v38  ;;  %1132 = vmatpush.bf16.msrb.mxu3 %v2137_v0  ;;  %v2070_v17 = vld [vmem:[#allocation7 + $0x420] sm:$0xf0]  ;;  %v2333_v24 = vld [vmem:[#allocation7 + $0x3e4] sm:$0xf0]  ;;  %v2265_v25 = vld [vmem:[#allocation7 + $0x1cc] sm:$0xf] }
  0x37   :  { %v1790_v26 = vld [vmem:[#allocation7 + $0x1e8] sm:$0xf0]  ;;  %v2073_v30 = vor.u32 %v2336_v12, %v2070_v17  ;;  %v2045_v34 = vor.u32 %v2333_v24, %v2044_v22  ;;  %v2012_v38 = vld [vmem:[#allocation7 + $0x388] sm:$0xf] }
  0x38   :  { %1117 = vmatpush.bf16.msrb.mxu2 %v1945_v31  ;;  %1082 = vmatpush.bf16.msra.mxu1 %v1813_v44  ;;  %v1693_v31 = vor.u32 %v2245_v21, %v1692_v20  ;;  %v1793_v35 = vor.u32 %v2265_v25, %v1790_v26  ;;  %v2325_v39 = vld [vmem:[#allocation7 + $0x3a4] sm:$0xf0]  ;;  %v2257_v40 = vld [vmem:[#allocation7 + $0x18c] sm:$0xf] }
  0x39   :  { %1070 = vmatmul.bf16.vlgmr.msra.gmra.mxu0 %v2597_v55  ;;  %v1758_v41 = vld [vmem:[#allocation7 + $0x1a8] sm:$0xf0]  ;;  %v2013_v46 = vor.u32 %v2325_v39, %v2012_v38  ;;  %v1628_v48 = vld [vmem:[#allocation7 + $0x88] sm:$0xf] }
  0x3a   :  { %1170 = vmatpush.bf16.msrb.mxu0 %v2173_v45  ;;  %1133 = vmatpush.bf16.msrb.mxu3 %v2105_v15  ;;  %v2313_v44 = vld [vmem:[#allocation7 + $0x34c] sm:$0xf]  ;;  %v2229_v49 = vld [vmem:[#allocation7 + $0xa4] sm:$0xf0] }
  0x3b   :  { %1083 = vmatmul.bf16.vlgmr.msra.gmra.mxu1 %v2599_v56  ;;  %v1982_v45 = vld [vmem:[#allocation7 + $0x368] sm:$0xf0]  ;;  %v1980_v50 = vld [vmem:[#allocation7 + $0x348] sm:$0xf]  ;;  %v1629_v57 = vor.u32 %v2229_v49, %v1628_v48 }
  0x3c   :  { %1118 = vmatpush.bf16.msrb.mxu2 %v1913_v47  ;;  %1140 = vmatpush.bf16.msrb.mxu1 %v1789_v51  ;;  %v1761_v47 = vor.u32 %v2257_v40, %v1758_v41  ;;  %v2317_v51 = vld [vmem:[#allocation7 + $0x364] sm:$0xf0]  ;;  %v2249_v52 = vld [vmem:[#allocation7 + $0x14c] sm:$0xf]  ;;  %v1985_v54 = vor.u32 %v2313_v44, %v1982_v45 }
  0x3d   :  { %v1726_v53 = vld [vmem:[#allocation7 + $0x168] sm:$0xf0]  ;;  %v1596_v62 = vld [vmem:[#allocation7 + $0x48] sm:$0xf] }
  0x3e   :  { %1171 = vmatpush.bf16.msrb.mxu0 %v2141_v60  ;;  %1134 = vmatpush.bf16.msrb.mxu3 %v2073_v30  ;;  %v2305_v58 = vld [vmem:[#allocation7 + $0x30c] sm:$0xf]  ;;  %v1981_v60 = vor.u32 %v2317_v51, %v1980_v50  ;;  %v2221_v63 = vld [vmem:[#allocation7 + $0x64] sm:$0xf0] }
  0x3f   :  { %v1950_v59 = vld [vmem:[#allocation7 + $0x328] sm:$0xf0]  ;;  %v1948_v0 = vld [vmem:[#allocation7 + $0x308] sm:$0xf]  ;;  %v1597_v5 = vor.u32 %v2221_v63, %v1596_v62  ;;  %v2270_v62 = vld [vmem:[#allocation7 + $0x1ec] sm:$0xf0] }
  0x40   :  { %1119 = vmatpush.bf16.msrb.mxu2 %v1881_v61  ;;  %1141 = vmatpush.bf16.msrb.mxu1 %v1757_v1  ;;  %v1729_v61 = vor.u32 %v2249_v52, %v1726_v53  ;;  %v2309_v1 = vld [vmem:[#allocation7 + $0x324] sm:$0xf0]  ;;  %v2241_v2 = vld [vmem:[#allocation7 + $0x10c] sm:$0xf]  ;;  %v1953_v4 = vor.u32 %v2305_v58, %v1950_v59  ;;  %v2266_v52 = vld [vmem:[#allocation7 + $0x1d4] sm:$0xf] }
  0x41   :  { %2195 = vmatmul.msk.bf16.vlgmr.msrb.gmra.mxu3 %vm1058_vm0, %v2593_v28  ;;  %v1694_v3 = vld [vmem:[#allocation7 + $0x128] sm:$0xf0]  ;;  %v1564_v10 = vld [vmem:[#allocation7 + $0x8] sm:$0xf]  ;;  %v1798_v53 = vld [vmem:[#allocation7 + $0x1f0] sm:$0xf0] }
  0x42   :  { %1172 = vmatpush.bf16.msrb.mxu0 %v2109_v8  ;;  %1153 = vmatpush.bf16.msra.mxu3 %v2045_v34  ;;  %v2297_v6 = vld [vmem:[#allocation7 + $0x2cc] sm:$0xf]  ;;  %v1949_v8 = vor.u32 %v2309_v1, %v1948_v0  ;;  %v1697_v9 = vor.u32 %v2241_v2, %v1694_v3  ;;  %v1916_v12 = vld [vmem:[#allocation7 + $0x2c8] sm:$0xf]  ;;  %v2052_v63 = vld [vmem:[#allocation7 + $0x3d0] sm:$0xf]  ;;  %v1801_v3 = vor.u32 %v2266_v52, %v1798_v53 }
  0x43   :  { %v1918_v7 = vld [vmem:[#allocation7 + $0x2e8] sm:$0xf0]  ;;  %v2301_v13 = vld [vmem:[#allocation7 + $0x2e4] sm:$0xf0]  ;;  %v2334_v0 = vld [vmem:[#allocation7 + $0x3ec] sm:$0xf0] }
  0x44   :  { %1120 = vmatpush.bf16.msrb.mxu2 %v1849_v11  ;;  %1142 = vmatpush.bf16.msrb.mxu1 %v1725_v16  ;;  %v2213_v11 = vld [vmem:[#allocation7 + $0x24] sm:$0xf0]  ;;  %v2233_v14 = vld [vmem:[#allocation7 + $0xcc] sm:$0xf]  ;;  %v1921_v16 = vor.u32 %v2297_v6, %v1918_v7  ;;  %v1917_v22 = vor.u32 %v2301_v13, %v1916_v12  ;;  %v2180_v1 = vld [vmem:[#allocation7 + $0x4d0] sm:$0xf] }
  0x45   :  { %v1662_v15 = vld [vmem:[#allocation7 + $0xe8] sm:$0xf0]  ;;  %v1565_v19 = vor.u32 %v2213_v11, %v1564_v10  ;;  %v1884_v24 = vld [vmem:[#allocation7 + $0x288] sm:$0xf]  ;;  %v2366_v2 = vld [vmem:[#allocation7 + $0x4ec] sm:$0xf0]  ;;  %v2053_v10 = vor.u32 %v2334_v0, %v2052_v63 }
  0x46   :  { %1173 = vmatpush.bf16.msrb.mxu0 %v2077_v23  ;;  %1154 = vmatpush.bf16.msra.mxu3 %v2013_v46  ;;  %v2361_v17 = vld [vmem:[#allocation7 + $0x4cc] sm:$0xf]  ;;  %v1665_v23 = vor.u32 %v2233_v14, %v1662_v15  ;;  %v2293_v26 = vld [vmem:[#allocation7 + $0x2a4] sm:$0xf0]  ;;  %v2181_v11 = vor.u32 %v2366_v2, %v2180_v1  ;;  %v1764_v12 = vld [vmem:[#allocation7 + $0x190] sm:$0xf] }
  0x47   :  { %v2174_v18 = vld [vmem:[#allocation7 + $0x4e8] sm:$0xf0]  ;;  %v1852_v37 = vld [vmem:[#allocation7 + $0x248] sm:$0xf]  ;;  %v2262_v13 = vld [vmem:[#allocation7 + $0x1ac] sm:$0xf0] }
  0x48   :  { %1121 = vmatpush.bf16.msrb.mxu2 %v1817_v27  ;;  %1143 = vmatpush.bf16.msrb.mxu1 %v1693_v31  ;;  %v2289_v20 = vld [vmem:[#allocation7 + $0x28c] sm:$0xf]  ;;  %v2177_v25 = vor.u32 %v2361_v17, %v2174_v18  ;;  %v2285_v39 = vld [vmem:[#allocation7 + $0x264] sm:$0xf0]  ;;  %v2020_v14 = vld [vmem:[#allocation7 + $0x390] sm:$0xf] }
  0x49   :  { %2196 = vmatmul.msk.bf16.vlgmr.msrb.gmra.mxu0 %vm1058_vm0, %v2593_v28  ;;  %v1886_v21 = vld [vmem:[#allocation7 + $0x2a8] sm:$0xf0]  ;;  %v1820_v45 = vld [vmem:[#allocation7 + $0x208] sm:$0xf]  ;;  %v1853_v49 = vor.u32 %v2285_v39, %v1852_v37  ;;  %v2326_v15 = vld [vmem:[#allocation7 + $0x3ac] sm:$0xf0] }
  0x4a   :  { %1192 = vmatpush.bf16.msra.mxu0 %v2049_v29  ;;  %1155 = vmatpush.bf16.msra.mxu3 %v1981_v60  ;;  %v2225_v27 = vld [vmem:[#allocation7 + $0x8c] sm:$0xf]  ;;  %v1889_v30 = vor.u32 %v2289_v20, %v1886_v21  ;;  %v2277_v46 = vld [vmem:[#allocation7 + $0x224] sm:$0xf0]  ;;  %v2358_v17 = vld [vmem:[#allocation7 + $0x4ac] sm:$0xf0] }
  0x4b   :  { %1122 = vmatmul.bf16.vlgmr.msrb.gmra.mxu2 %v2599_v56  ;;  %v1630_v29 = vld [vmem:[#allocation7 + $0xa8] sm:$0xf0]  ;;  %v2250_v20 = vld [vmem:[#allocation7 + $0x154] sm:$0xf]  ;;  %v1700_v37 = vld [vmem:[#allocation7 + $0x110] sm:$0xf] }
  0x4c   :  { %1179 = vmatpush.bf16.msra.mxu2 %v1793_v35  ;;  %1144 = vmatpush.bf16.msrb.mxu1 %v1661_v43  ;;  %v2353_v31 = vld [vmem:[#allocation7 + $0x48c] sm:$0xf]  ;;  %v1885_v35 = vor.u32 %v2293_v26, %v1884_v24  ;;  %v1633_v36 = vor.u32 %v2225_v27, %v1630_v29  ;;  %v1734_v21 = vld [vmem:[#allocation7 + $0x170] sm:$0xf0]  ;;  %v1732_v24 = vld [vmem:[#allocation7 + $0x150] sm:$0xf] }
  0x4d   :  { %v2142_v32 = vld [vmem:[#allocation7 + $0x4a8] sm:$0xf0]  ;;  %v1988_v26 = vld [vmem:[#allocation7 + $0x350] sm:$0xf]  ;;  %v1638_v63 = vld [vmem:[#allocation7 + $0xb0] sm:$0xf0] }
  0x4e   :  { %1193 = vmatpush.bf16.msra.mxu0 %v2017_v42  ;;  %1156 = vmatpush.bf16.msra.mxu3 %v1949_v8  ;;  %v2281_v33 = vld [vmem:[#allocation7 + $0x24c] sm:$0xf]  ;;  %v2145_v38 = vor.u32 %v2353_v31, %v2142_v32  ;;  %v2258_v8 = vld [vmem:[#allocation7 + $0x194] sm:$0xf]  ;;  %v2318_v27 = vld [vmem:[#allocation7 + $0x36c] sm:$0xf0]  ;;  %v1737_v31 = vor.u32 %v2250_v20, %v1734_v21 }
  0x4f   :  { %v1854_v34 = vld [vmem:[#allocation7 + $0x268] sm:$0xf0]  ;;  %v2116_v29 = vld [vmem:[#allocation7 + $0x450] sm:$0xf]  ;;  %v2306_v20 = vld [vmem:[#allocation7 + $0x314] sm:$0xf] }
  0x50   :  { %1180 = vmatpush.bf16.msra.mxu2 %v1761_v47  ;;  %1145 = vmatpush.bf16.msrb.mxu1 %v1629_v57  ;;  %v2217_v40 = vld [vmem:[#allocation7 + $0x4c] sm:$0xf]  ;;  %v1857_v42 = vor.u32 %v2281_v33, %v1854_v34  ;;  %v2242_v33 = vld [vmem:[#allocation7 + $0x114] sm:$0xf]  ;;  %v1956_v39 = vld [vmem:[#allocation7 + $0x310] sm:$0xf] }
  0x51   :  { %v1598_v41 = vld [vmem:[#allocation7 + $0x68] sm:$0xf0]  ;;  %v1702_v34 = vld [vmem:[#allocation7 + $0x130] sm:$0xf0]  ;;  %v2238_v52 = vld [vmem:[#allocation7 + $0xec] sm:$0xf0] }
  0x52   :  { %1194 = vmatpush.bf16.msra.mxu0 %v1985_v54  ;;  %1157 = vmatpush.bf16.msra.mxu3 %v1917_v22  ;;  %v2345_v43 = vld [vmem:[#allocation7 + $0x44c] sm:$0xf]  ;;  %v1601_v50 = vor.u32 %v2217_v40, %v1598_v41  ;;  %v2021_v22 = vor.u32 %v2326_v15, %v2020_v14  ;;  %v2310_v40 = vld [vmem:[#allocation7 + $0x32c] sm:$0xf0] }
  0x53   :  { %v2110_v44 = vld [vmem:[#allocation7 + $0x468] sm:$0xf0]  ;;  %v2084_v41 = vld [vmem:[#allocation7 + $0x410] sm:$0xf] }
  0x54   :  { %1181 = vmatpush.bf16.msra.mxu2 %v1729_v61  ;;  %1146 = vmatpush.bf16.msrb.mxu1 %v1597_v5  ;;  %v2273_v47 = vld [vmem:[#allocation7 + $0x20c] sm:$0xf]  ;;  %v2113_v54 = vor.u32 %v2345_v43, %v2110_v44  ;;  %v1796_v61 = vld [vmem:[#allocation7 + $0x1d0] sm:$0xf]  ;;  %v1705_v43 = vor.u32 %v2242_v33, %v1702_v34  ;;  %v2330_v44 = vld [vmem:[#allocation7 + $0x3d4] sm:$0xf] }
  0x55   :  { %v1822_v48 = vld [vmem:[#allocation7 + $0x228] sm:$0xf0]  ;;  %v1797_v7 = vor.u32 %v2270_v62, %v1796_v61  ;;  %v2226_v62 = vld [vmem:[#allocation7 + $0x94] sm:$0xf]  ;;  %v1636_v1 = vld [vmem:[#allocation7 + $0x90] sm:$0xf] }
  0x56   :  { %1195 = vmatpush.bf16.msra.mxu0 %v1953_v4  ;;  %1158 = vmatpush.bf16.msra.mxu3 %v1885_v35  ;;  %v2209_v51 = vld [vmem:[#allocation7 + $0xc] sm:$0xf]  ;;  %v1825_v60 = vor.u32 %v2273_v47, %v1822_v48  ;;  %v1821_v4 = vor.u32 %v2277_v46, %v1820_v45  ;;  %v1989_v35 = vor.u32 %v2318_v27, %v1988_v26  ;;  %v2054_v45 = vld [vmem:[#allocation7 + $0x3f0] sm:$0xf0]  ;;  %v2230_v2 = vld [vmem:[#allocation7 + $0xac] sm:$0xf0] }
  0x57   :  { %v1566_v57 = vld [vmem:[#allocation7 + $0x28] sm:$0xf0]  ;;  %v2234_v47 = vld [vmem:[#allocation7 + $0xd4] sm:$0xf]  ;;  %v2057_v53 = vor.u32 %v2330_v44, %v2054_v45  ;;  %v1604_v15 = vld [vmem:[#allocation7 + $0x50] sm:$0xf] }
  0x58   :  { %1182 = vmatpush.bf16.msra.mxu2 %v1697_v9  ;;  %1147 = vmatpush.bf16.msrb.mxu1 %v1565_v19  ;;  %v2337_v58 = vld [vmem:[#allocation7 + $0x40c] sm:$0xf]  ;;  %v1569_v5 = vor.u32 %v2209_v51, %v1566_v57  ;;  %v1766_v9 = vld [vmem:[#allocation7 + $0x1b0] sm:$0xf0]  ;;  %v1765_v19 = vor.u32 %v2262_v13, %v1764_v12  ;;  %v1668_v51 = vld [vmem:[#allocation7 + $0xd0] sm:$0xf] }
  0x59   :  { %v2078_v59 = vld [vmem:[#allocation7 + $0x428] sm:$0xf0]  ;;  %v1769_v18 = vor.u32 %v2258_v8, %v1766_v9  ;;  %v1670_v48 = vld [vmem:[#allocation7 + $0xf0] sm:$0xf0]  ;;  %v2302_v57 = vld [vmem:[#allocation7 + $0x2ec] sm:$0xf0]  ;;  %v1669_v61 = vor.u32 %v2238_v52, %v1668_v51 }
  0x5a   :  { %1196 = vmatpush.bf16.msra.mxu0 %v1921_v16  ;;  %1159 = vmatpush.bf16.msra.mxu3 %v1853_v49  ;;  %v2081_v6 = vor.u32 %v2337_v58, %v2078_v59  ;;  %v2148_v16 = vld [vmem:[#allocation7 + $0x490] sm:$0xf]  ;;  %v1957_v49 = vor.u32 %v2310_v40, %v1956_v39  ;;  %v1673_v58 = vor.u32 %v2234_v47, %v1670_v48  ;;  %v2322_v59 = vld [vmem:[#allocation7 + $0x394] sm:$0xf]  ;;  %v2546_v9 = vmov 0  }
  0x5b   :  { %1148 = vmatmul.bf16.vlgmr.msrb.gmra.mxu1 %v2597_v55  ;;  %v1990_v8 = vld [vmem:[#allocation7 + $0x370] sm:$0xf0]  ;;  %2376 = vset.pattern.permute.xlu0 %v2546_v9  ;;  %v1828_v26 = vld [vmem:[#allocation7 + $0x210] sm:$0xf]  ;;  %v2367_v33 = vld [vmem:[#allocation7 + $0x4f4] sm:$0xf0] }
  0x5c   :  { %1183 = vmatpush.bf16.msra.mxu2 %v1665_v23  ;;  %1209 = vmatpush.bf16.msra.mxu1 %v2177_v25  ;;  %v2149_v23 = vor.u32 %v2358_v17, %v2148_v16  ;;  %v2254_v25 = vld [vmem:[#allocation7 + $0x16c] sm:$0xf0]  ;;  %v2218_v12 = vld [vmem:[#allocation7 + $0x54] sm:$0xf]  ;;  %v1804_v40 = vld [vmem:[#allocation7 + $0x1d8] sm:$0xf] }
  0x5d   :  { %v1733_v32 = vor.u32 %v2254_v25, %v1732_v24  ;;  %v1606_v13 = vld [vmem:[#allocation7 + $0x70] sm:$0xf0]  ;;  %v2222_v16 = vld [vmem:[#allocation7 + $0x6c] sm:$0xf0]  ;;  %v2359_v47 = vld [vmem:[#allocation7 + $0x4b4] sm:$0xf0] }
  0x5e   :  { %1197 = vmatpush.bf16.msra.mxu0 %v1889_v30  ;;  %1160 = vmatpush.bf16.msra.mxu3 %v1821_v4  ;;  %v2350_v30 = vld [vmem:[#allocation7 + $0x46c] sm:$0xf0]  ;;  %v1609_v21 = vor.u32 %v2218_v12, %v1606_v13  ;;  %v1605_v25 = vor.u32 %v2222_v16, %v1604_v15  ;;  %v2210_v27 = vld [vmem:[#allocation7 + $0x14] sm:$0xf]  ;;  %v2343_v12 = vld [vmem:[#allocation7 + $0x434] sm:$0xf0] }
  0x5f   :  { %v1892_v4 = vld [vmem:[#allocation7 + $0x290] sm:$0xf]  ;;  %v1926_v39 = vld [vmem:[#allocation7 + $0x2f0] sm:$0xf0]  ;;  %v2331_v16 = vld [vmem:[#allocation7 + $0x3dc] sm:$0xf] }
  0x60   :  { %1184 = vmatpush.bf16.msra.mxu2 %v1633_v36  ;;  %1210 = vmatpush.bf16.msra.mxu1 %v2145_v38  ;;  %v2117_v36 = vor.u32 %v2350_v30, %v2116_v29  ;;  %v2246_v38 = vld [vmem:[#allocation7 + $0x12c] sm:$0xf0]  ;;  %v1574_v29 = vld [vmem:[#allocation7 + $0x30] sm:$0xf0] }
  0x61   :  { %1161 = vmatmul.bf16.vlgmr.msra.gmra.mxu3 %v2599_v56  ;;  %v1701_v46 = vor.u32 %v2246_v38, %v1700_v37  ;;  %v2214_v24 = vld [vmem:[#allocation7 + $0x2c] sm:$0xf0]  ;;  %v2182_v37 = vld [vmem:[#allocation7 + $0x4f0] sm:$0xf0]  ;;  %v1577_v38 = vor.u32 %v2210_v27, %v1574_v29 }
  0x62   :  { %1198 = vmatpush.bf16.msra.mxu0 %v1857_v42  ;;  %1218 = vmatpush.bf16.msrb.mxu3 %v1797_v7  ;;  %v2342_v42 = vld [vmem:[#allocation7 + $0x42c] sm:$0xf0]  ;;  %v2314_v7 = vld [vmem:[#allocation7 + $0x354] sm:$0xf] }
  0x63   :  { %v1993_v17 = vor.u32 %v2314_v7, %v1990_v8  ;;  %v2354_v51 = vld [vmem:[#allocation7 + $0x494] sm:$0xf] }
  0x64   :  { %1185 = vmatpush.bf16.msra.mxu2 %v1601_v50  ;;  %1211 = vmatpush.bf16.msra.mxu1 %v2113_v54  ;;  %v2085_v50 = vor.u32 %v2342_v42, %v2084_v41  ;;  %v1924_v54 = vld [vmem:[#allocation7 + $0x2d0] sm:$0xf]  ;;  %v2271_v41 = vld [vmem:[#allocation7 + $0x1f4] sm:$0xf0]  ;;  %v2150_v52 = vld [vmem:[#allocation7 + $0x4b0] sm:$0xf0] }
  0x65   :  { %v1925_v0 = vor.u32 %v2302_v57, %v1924_v54  ;;  %v1772_v54 = vld [vmem:[#allocation7 + $0x198] sm:$0xf]  ;;  %v2274_v8 = vld [vmem:[#allocation7 + $0x214] sm:$0xf] }
  0x66   :  { %1199 = vmatpush.bf16.msra.mxu0 %v1825_v60  ;;  %1219 = vmatpush.bf16.msrb.mxu3 %v1765_v19  ;;  %v2022_v60 = vld [vmem:[#allocation7 + $0x3b0] sm:$0xf0]  ;;  %v2286_v19 = vld [vmem:[#allocation7 + $0x26c] sm:$0xf0]  ;;  %v2263_v57 = vld [vmem:[#allocation7 + $0x1b4] sm:$0xf0] }
  0x67   :  { %v1830_v9 = vld [vmem:[#allocation7 + $0x230] sm:$0xf0] }
  0x68   :  { %1186 = vmatpush.bf16.msra.mxu2 %v1569_v5  ;;  %1212 = vmatpush.bf16.msra.mxu1 %v2081_v6  ;;  %v2294_v5 = vld [vmem:[#allocation7 + $0x2ac] sm:$0xf0]  ;;  %v1641_v6 = vor.u32 %v2226_v62, %v1638_v63  ;;  %v1773_v63 = vor.u32 %v2263_v57, %v1772_v54  ;;  %v2086_v15 = vld [vmem:[#allocation7 + $0x430] sm:$0xf0]  ;;  %v1833_v27 = vor.u32 %v2274_v8, %v1830_v9  ;;  %v2307_v54 = vld [vmem:[#allocation7 + $0x31c] sm:$0xf] }
  0x69   :  { %1200 = vmatmul.bf16.vlgmr.msra.gmra.mxu0 %v2599_v56  ;;  %v1893_v14 = vor.u32 %v2294_v5, %v1892_v4  ;;  %v1740_v4 = vld [vmem:[#allocation7 + $0x158] sm:$0xf]  ;;  %v1966_v57 = vld [vmem:[#allocation7 + $0x338] sm:$0xf0] }
  0x6a   :  { %1257 = vmatpush.bf16.msrb.mxu0 %v1801_v3  ;;  %1220 = vmatpush.bf16.msrb.mxu3 %v1733_v32  ;;  %v2025_v3 = vor.u32 %v2322_v59, %v2022_v60  ;;  %v2188_v32 = vld [vmem:[#allocation7 + $0x4d8] sm:$0xf]  ;;  %v2153_v59 = vor.u32 %v2354_v51, %v2150_v52  ;;  %v1742_v51 = vld [vmem:[#allocation7 + $0x178] sm:$0xf0] }
  0x6b   :  { %1187 = vmatmul.bf16.vlgmr.msra.gmra.mxu2 %v2597_v55  ;;  %2197 = vmatmul.msk.bf16.vlgmr.msra.gmra.mxu1 %vm1058_vm0, %v2593_v28  ;;  %v2124_v60 = vld [vmem:[#allocation7 + $0x458] sm:$0xf] }
  0x6c   :  { %1231 = vmatpush.bf16.msrb.mxu1 %v2053_v10  ;;  %1248 = vmatpush.bf16.msrb.mxu2 %v2181_v11  ;;  %v1490_v10 = vld [vmem:[%s2786_s1] sm:$0xff]  ;;  %v1637_v11 = vor.u32 %v2230_v2, %v1636_v1  ;;  %v2346_v1 = vld [vmem:[#allocation7 + $0x454] sm:$0xf]  ;;  %v2255_v5 = vld [vmem:[#allocation7 + $0x174] sm:$0xf0] }
  0x6d   :  { %1499 = vperm.xlu0 %2376, %v1490_v10   ;;  %v2118_v2 = vld [vmem:[#allocation7 + $0x470] sm:$0xf0]  ;;  %v1580_v8 = vld [vmem:[#allocation7 + $0x18] sm:$0xf] }
  0x6e   :  { %1258 = vmatpush.bf16.msrb.mxu0 %v1769_v18  ;;  %1221 = vmatpush.bf16.msrb.mxu3 %v1701_v46  ;;  %v1860_v18 = vld [vmem:[#allocation7 + $0x250] sm:$0xf]  ;;  %v2156_v46 = vld [vmem:[#allocation7 + $0x498] sm:$0xf]  ;;  %v2121_v7 = vor.u32 %v2346_v1, %v2118_v2  ;;  %v2338_v10 = vld [vmem:[#allocation7 + $0x414] sm:$0xf]  ;;  %v1969_v2 = vor.u32 %v2307_v54, %v1966_v57 }
  0x6f   :  { %v1861_v30 = vor.u32 %v2286_v19, %v1860_v18  ;;  %v1708_v18 = vld [vmem:[#allocation7 + $0x118] sm:$0xf]  ;;  %v1710_v1 = vld [vmem:[#allocation7 + $0x138] sm:$0xf0] }
  0x70   :  { %1232 = vmatpush.bf16.msrb.mxu1 %v2021_v22  ;;  %1249 = vmatpush.bf16.msrb.mxu2 %v2149_v23  ;;  %v1958_v22 = vld [vmem:[#allocation7 + $0x330] sm:$0xf0]  ;;  %v1572_v23 = vld [vmem:[#allocation7 + $0x10] sm:$0xf]  ;;  %v2247_v19 = vld [vmem:[#allocation7 + $0x134] sm:$0xf0] }
  0x71   :  { %v1961_v34 = vor.u32 %v2306_v20, %v1958_v22  ;;  %v1573_v42 = vor.u32 %v2214_v24, %v1572_v23  ;;  %v2060_v20 = vld [vmem:[#allocation7 + $0x3d8] sm:$0xf]  ;;  %v2267_v23 = vld [vmem:[#allocation7 + $0x1dc] sm:$0xf]  ;;  %v1709_v29 = vor.u32 %v2247_v19, %v1708_v18 }
  0x72   :  { %1259 = vmatpush.bf16.msrb.mxu0 %v1737_v31  ;;  %1222 = vmatpush.bf16.msrb.mxu3 %v1669_v61  ;;  %v2278_v31 = vld [vmem:[#allocation7 + $0x22c] sm:$0xf0]  ;;  %v2351_v61 = vld [vmem:[#allocation7 + $0x474] sm:$0xf0]  ;;  %v1806_v24 = vld [vmem:[#allocation7 + $0x1f8] sm:$0xf0] }
  0x73   :  { %v1829_v44 = vor.u32 %v2278_v31, %v1828_v26  ;;  %v2335_v22 = vld [vmem:[#allocation7 + $0x3f4] sm:$0xf0]  ;;  %v2030_v31 = vld [vmem:[#allocation7 + $0x3b8] sm:$0xf0] }
  0x74   :  { %1233 = vmatpush.bf16.msrb.mxu1 %v1989_v35  ;;  %1250 = vmatpush.bf16.msrb.mxu2 %v2117_v36  ;;  %v2298_v35 = vld [vmem:[#allocation7 + $0x2d4] sm:$0xf]  ;;  %v2215_v9 = vld [vmem:[#allocation7 + $0x34] sm:$0xf0]  ;;  %v2291_v18 = vld [vmem:[#allocation7 + $0x29c] sm:$0xf] }
  0x75   :  { %v2362_v36 = vld [vmem:[#allocation7 + $0x4d4] sm:$0xf]  ;;  %v1929_v48 = vor.u32 %v2298_v35, %v1926_v39  ;;  %v2239_v35 = vld [vmem:[#allocation7 + $0xf4] sm:$0xf0]  ;;  %v1774_v39 = vld [vmem:[#allocation7 + $0x1b8] sm:$0xf0] }
  0x76   :  { %1260 = vmatpush.bf16.msrb.mxu0 %v1705_v43  ;;  %1223 = vmatpush.bf16.msrb.mxu3 %v1637_v11  ;;  %v2189_v43 = vor.u32 %v2367_v33, %v2188_v32  ;;  %v2185_v45 = vor.u32 %v2362_v36, %v2182_v37  ;;  %v2092_v11 = vld [vmem:[#allocation7 + $0x418] sm:$0xf]  ;;  %v2061_v32 = vor.u32 %v2335_v22, %v2060_v20  ;;  %v1902_v19 = vld [vmem:[#allocation7 + $0x2b8] sm:$0xf0] }
  0x77   :  { %v1809_v33 = vor.u32 %v2267_v23, %v1806_v24  ;;  %v2028_v36 = vld [vmem:[#allocation7 + $0x398] sm:$0xf]  ;;  %v2094_v54 = vld [vmem:[#allocation7 + $0x438] sm:$0xf0] }
  0x78   :  { %1234 = vmatpush.bf16.msrb.mxu1 %v1957_v49  ;;  %1251 = vmatpush.bf16.msrb.mxu2 %v2085_v50  ;;  %v1805_v49 = vor.u32 %v2271_v41, %v1804_v40  ;;  %v2290_v50 = vld [vmem:[#allocation7 + $0x294] sm:$0xf]  ;;  %v2327_v37 = vld [vmem:[#allocation7 + $0x3b4] sm:$0xf0] }
  0x79   :  { %v1900_v22 = vld [vmem:[#allocation7 + $0x298] sm:$0xf] }
  0x7a   :  { %1261 = vmatpush.bf16.msrb.mxu0 %v1673_v58  ;;  %1224 = vmatpush.bf16.msrb.mxu3 %v1605_v25  ;;  %v2157_v58 = vor.u32 %v2359_v47, %v2156_v46  ;;  %v2089_v25 = vor.u32 %v2338_v10, %v2086_v15  ;;  %v1644_v46 = vld [vmem:[#allocation7 + $0x98] sm:$0xf]  ;;  %v2363_v15 = vld [vmem:[#allocation7 + $0x4dc] sm:$0xf] }
  0x7b   :  { %2198 = vmatmul.msk.bf16.vlgmr.msrb.gmra.mxu2 %vm1058_vm0, %v2593_v28  ;;  %v2231_v47 = vld [vmem:[#allocation7 + $0xb4] sm:$0xf0] }
  0x7c   :  { %1270 = vmatpush.bf16.msra.mxu2 %v2057_v53  ;;  %1235 = vmatpush.bf16.msrb.mxu1 %v1925_v0  ;;  %v1894_v53 = vld [vmem:[#allocation7 + $0x2b0] sm:$0xf0]  ;;  %v1932_v10 = vld [vmem:[#allocation7 + $0x2d8] sm:$0xf] }
  0x7d   :  { %v1897_v62 = vor.u32 %v2290_v50, %v1894_v53  ;;  %v2282_v0 = vld [vmem:[#allocation7 + $0x254] sm:$0xf]  ;;  %v2251_v50 = vld [vmem:[#allocation7 + $0x15c] sm:$0xf]  ;;  %v1645_v53 = vor.u32 %v2231_v47, %v1644_v46  ;;  %v2295_v24 = vld [vmem:[#allocation7 + $0x2b4] sm:$0xf0] }
  0x7e   :  { %1262 = vmatpush.bf16.msrb.mxu0 %v1641_v6  ;;  %1225 = vmatpush.bf16.msrb.mxu3 %v1573_v42  ;;  %v2125_v6 = vor.u32 %v2351_v61, %v2124_v60  ;;  %v2315_v42 = vld [vmem:[#allocation7 + $0x35c] sm:$0xf]  ;;  %v1612_v60 = vld [vmem:[#allocation7 + $0x58] sm:$0xf] }
  0x7f   :  { %v2223_v61 = vld [vmem:[#allocation7 + $0x74] sm:$0xf0] }
  0x80   :  { %1271 = vmatpush.bf16.msra.mxu2 %v2025_v3  ;;  %1236 = vmatpush.bf16.msrb.mxu1 %v1893_v14  ;;  %v1862_v3 = vld [vmem:[#allocation7 + $0x270] sm:$0xf0]  ;;  %v1741_v14 = vor.u32 %v2255_v5, %v1740_v4  ;;  %v2299_v4 = vld [vmem:[#allocation7 + $0x2dc] sm:$0xf]  ;;  %v1836_v47 = vld [vmem:[#allocation7 + $0x218] sm:$0xf] }
  0x81   :  { %1226 = vmatmul.bf16.vlgmr.msrb.gmra.mxu3 %v2597_v55  ;;  %v1865_v13 = vor.u32 %v2282_v0, %v1862_v3  ;;  %v2243_v0 = vld [vmem:[#allocation7 + $0x11c] sm:$0xf]  ;;  %v1613_v3 = vor.u32 %v2223_v61, %v1612_v60  ;;  %v2637_v60 = vld [vmem:[%s2789_s4] sm:$0xff]  ;;  %s2547_s4 = smov [#allocation9]  }
  0x82   :  { %1263 = vmatpush.bf16.msrb.mxu0 %v1609_v21  ;;  %1287 = vmatpush.bf16.msra.mxu3 %v2185_v45  ;;  %v2093_v21 = vor.u32 %v2343_v12, %v2092_v11  ;;  %v1934_v5 = vld [vmem:[#allocation7 + $0x2f8] sm:$0xf0]  ;;  %v2303_v11 = vld [vmem:[#allocation7 + $0x2f4] sm:$0xf0]  ;;  %v232_v61 = vperm.slane %v2637_v60, 0  ;;  %s1536_s14 = sshll.u32 %s2547_s4, 4  ;;  %s1537_s14 = int_to_ptr.vmem [resolvable:$true] %s1536_s14 }
  0x83   :  { %v2235_v12 = vld [vmem:[#allocation7 + $0xdc] sm:$0xf]  ;;  %v1933_v20 = vor.u32 %v2303_v11, %v1932_v10 }
  0x84   :  { %1272 = vmatpush.bf16.msra.mxu2 %v1993_v17  ;;  %1237 = vmatpush.bf16.msrb.mxu1 %v1861_v30  ;;  %v2062_v17 = vld [vmem:[#allocation7 + $0x3f8] sm:$0xf0] }
  0x85   :  { %v2065_v26 = vor.u32 %v2331_v16, %v2062_v17  ;;  %v2323_v30 = vld [vmem:[#allocation7 + $0x39c] sm:$0xf]  ;;  %v1581_v17 = vor.u32 %v2215_v9, %v1580_v8 }
  0x86   :  { %1264 = vmatpush.bf16.msrb.mxu0 %v1577_v38  ;;  %1288 = vmatpush.bf16.msra.mxu3 %v2153_v59  ;;  %v2259_v38 = vld [vmem:[#allocation7 + $0x19c] sm:$0xf]  ;;  %v2033_v40 = vor.u32 %v2323_v30, %v2030_v31  ;;  %v1745_v59 = vor.u32 %v2251_v50, %v1742_v51 }
  0x87   :  { %v1777_v45 = vor.u32 %v2259_v38, %v1774_v39  ;;  %v2190_v16 = vld [vmem:[#allocation7 + $0x4f8] sm:$0xf0] }
  0x88   :  { %1273 = vmatpush.bf16.msra.mxu2 %v1961_v34  ;;  %1238 = vmatpush.bf16.msrb.mxu1 %v1829_v44  ;;  %v1676_v34 = vld [vmem:[#allocation7 + $0xd8] sm:$0xf]  ;;  %v2029_v44 = vor.u32 %v2327_v37, %v2028_v36  ;;  %v2193_v23 = vor.u32 %v2363_v15, %v2190_v16  ;;  %v2158_v30 = vld [vmem:[#allocation7 + $0x4b8] sm:$0xf0] }
  0x89   :  { %1265 = vmatmul.bf16.vlgmr.msrb.gmra.mxu0 %v2597_v55  ;;  %v1677_v41 = vor.u32 %v2239_v35, %v1676_v34  ;;  %v2283_v31 = vld [vmem:[#allocation7 + $0x25c] sm:$0xf]  ;;  %v1868_v35 = vld [vmem:[#allocation7 + $0x258] sm:$0xf] }
  0x8a   :  { %1326 = vmatpush.bf16.msra.mxu0 %v2189_v43  ;;  %1289 = vmatpush.bf16.msra.mxu3 %v2121_v7  ;;  %v1998_v43 = vld [vmem:[#allocation7 + $0x378] sm:$0xf0]  ;;  %v1713_v7 = vor.u32 %v2243_v0, %v1710_v1  ;;  %v2287_v37 = vld [vmem:[#allocation7 + $0x274] sm:$0xf0] }
  0x8b   :  { %1239 = vmatmul.bf16.vlgmr.msrb.gmra.mxu1 %v2599_v56  ;;  %v2001_v52 = vor.u32 %v2315_v42, %v1998_v43  ;;  %v2219_v38 = vld [vmem:[#allocation7 + $0x5c] sm:$0xf] }
  0x8c   :  { %1274 = vmatpush.bf16.msra.mxu2 %v1929_v48  ;;  %1296 = vmatpush.bf16.msra.mxu1 %v1805_v49  ;;  %v1996_v48 = vld [vmem:[#allocation7 + $0x358] sm:$0xf]  ;;  %v1614_v39 = vld [vmem:[#allocation7 + $0x78] sm:$0xf0] }
  0x8d   :  { %v2319_v49 = vld [vmem:[#allocation7 + $0x374] sm:$0xf0]  ;;  %v2126_v42 = vld [vmem:[#allocation7 + $0x478] sm:$0xf0]  ;;  %v1617_v46 = vor.u32 %v2219_v38, %v1614_v39 }
  0x8e   :  { %1327 = vmatpush.bf16.msra.mxu0 %v2157_v58  ;;  %1290 = vmatpush.bf16.msra.mxu3 %v2089_v25  ;;  %v1997_v58 = vor.u32 %v2319_v49, %v1996_v48  ;;  %v2227_v25 = vld [vmem:[#allocation7 + $0x9c] sm:$0xf]  ;;  %v2279_v49 = vld [vmem:[#allocation7 + $0x234] sm:$0xf0] }
  0x8f   :  { %v2275_v43 = vld [vmem:[#allocation7 + $0x21c] sm:$0xf]  ;;  %v1837_v57 = vor.u32 %v2279_v49, %v1836_v47 }
  0x90   :  { %1275 = vmatpush.bf16.msra.mxu2 %v1897_v62  ;;  %1297 = vmatpush.bf16.msra.mxu1 %v1773_v63  ;;  %v1964_v62 = vld [vmem:[#allocation7 + $0x318] sm:$0xf]  ;;  %v2211_v50 = vld [vmem:[#allocation7 + $0x1c] sm:$0xf] }
  0x91   :  { %2199 = vmatmul.msk.bf16.vlgmr.msra.gmra.mxu3 %vm1058_vm0, %v2593_v28  ;;  %v2311_v63 = vld [vmem:[#allocation7 + $0x334] sm:$0xf0]  ;;  %v1582_v51 = vld [vmem:[#allocation7 + $0x38] sm:$0xf0] }
  0x92   :  { %1328 = vmatpush.bf16.msra.mxu0 %v2125_v6  ;;  %1309 = vmatpush.bf16.msrb.mxu3 %v2061_v32  ;;  %v1965_v6 = vor.u32 %v2311_v63, %v1964_v62  ;;  %v1870_v32 = vld [vmem:[#allocation7 + $0x278] sm:$0xf0] }
  0x94   :  { %1276 = vmatpush.bf16.msra.mxu2 %v1865_v13  ;;  %1298 = vmatpush.bf16.msra.mxu1 %v1741_v14  ;;  %v1678_v13 = vld [vmem:[#allocation7 + $0xf8] sm:$0xf0]  ;;  %v1937_v14 = vor.u32 %v2299_v4, %v1934_v5 }
  0x96   :  { %1329 = vmatpush.bf16.msra.mxu0 %v2093_v21  ;;  %1310 = vmatpush.bf16.msrb.mxu3 %v2029_v44  ;;  %v1681_v21 = vor.u32 %v2235_v12, %v1678_v13  ;;  %v1838_v44 = vld [vmem:[#allocation7 + $0x238] sm:$0xf0] }
  0x98   :  { %1277 = vmatpush.bf16.msra.mxu2 %v1833_v27  ;;  %1299 = vmatpush.bf16.msra.mxu1 %v1709_v29  ;;  %v1905_v27 = vor.u32 %v2291_v18, %v1902_v19  ;;  %v2355_v29 = vld [vmem:[#allocation7 + $0x49c] sm:$0xf]  ;;  %v234_v18 = vperm.slane %v2637_v60, 2 }
  0x99   :  { %2200 = vmatmul.msk.bf16.vlgmr.msra.gmra.mxu0 %vm1058_vm0, %v2593_v28  ;;  %v2161_v36 = vor.u32 %v2355_v29, %v2158_v30 }
  0x9a   :  { %1348 = vmatpush.bf16.msrb.mxu0 %v2065_v26  ;;  %1311 = vmatpush.bf16.msrb.mxu3 %v1997_v58  ;;  %v1646_v26 = vld [vmem:[#allocation7 + $0xb8] sm:$0xf0]  ;;  %v1585_v58 = vor.u32 %v2211_v50, %v1582_v51 }
  0x9b   :  { %1278 = vmatmul.bf16.vlgmr.msra.gmra.mxu2 %v2599_v56  ;;  %v1649_v34 = vor.u32 %v2227_v25, %v1646_v26 }
  0x9c   :  { %1335 = vmatpush.bf16.msrb.mxu2 %v1809_v33  ;;  %1300 = vmatpush.bf16.msra.mxu1 %v1677_v41  ;;  %v1901_v33 = vor.u32 %v2295_v24, %v1900_v22  ;;  %v2347_v41 = vld [vmem:[#allocation7 + $0x45c] sm:$0xf] }
  0x9d   :  { %v2129_v48 = vor.u32 %v2347_v41, %v2126_v42 }
  0x9e   :  { %1349 = vmatpush.bf16.msrb.mxu0 %v2033_v40  ;;  %1312 = vmatpush.bf16.msrb.mxu3 %v1965_v6  ;;  %v1873_v40 = vor.u32 %v2283_v31, %v1870_v32  ;;  %v233_v6 = vperm.slane %v2637_v60, 1  ;;  %v235_v32 = vperm.slane %v2637_v60, 3 }
  0xa0   :  { %1336 = vmatpush.bf16.msrb.mxu2 %v1777_v45  ;;  %1301 = vmatpush.bf16.msra.mxu1 %v1645_v53  ;;  %v1869_v45 = vor.u32 %v2287_v37, %v1868_v35  ;;  %v2339_v53 = vld [vmem:[#allocation7 + $0x41c] sm:$0xf] }
  0xa2   :  { %1350 = vmatpush.bf16.msrb.mxu0 %v2001_v52  ;;  %1313 = vmatpush.bf16.msrb.mxu3 %v1933_v20  ;;  %v1841_v52 = vor.u32 %v2275_v43, %v1838_v44  ;;  %v236_v43 = vperm.slane %v2637_v60, 4 }
  0xa4   :  { %1337 = vmatpush.bf16.msrb.mxu2 %v1745_v59  ;;  %1302 = vmatpush.bf16.msra.mxu1 %v1613_v3  ;;  %v2097_v59 = vor.u32 %v2339_v53, %v2094_v54 }
  0xa6   :  { %1351 = vmatpush.bf16.msrb.mxu0 %v1969_v2  ;;  %1314 = vmatpush.bf16.msrb.mxu3 %v1901_v33 }
  0xa8   :  { %1338 = vmatpush.bf16.msrb.mxu2 %v1713_v7  ;;  %1303 = vmatpush.bf16.msra.mxu1 %v1581_v17 }
  0xaa   :  { %1352 = vmatpush.bf16.msrb.mxu0 %v1937_v14  ;;  %1315 = vmatpush.bf16.msrb.mxu3 %v1869_v45  ;;  %v237_v45 = vperm.slane %v2637_v60, 5 }
  0xab   :  { %1304 = vmatmul.bf16.vlgmr.msra.gmra.mxu1 %v2597_v55 }
  0xac   :  { %1339 = vmatpush.bf16.msrb.mxu2 %v1681_v21  ;;  %1365 = vmatpush.bf16.msrb.mxu1 %v2193_v23 }
  0xae   :  { %1353 = vmatpush.bf16.msrb.mxu0 %v1905_v27  ;;  %1316 = vmatpush.bf16.msrb.mxu3 %v1837_v57  ;;  %v1097_v62 = vpop.f32.mrf.mxu2 }
  0xb0   :  { %1340 = vmatpush.bf16.msrb.mxu2 %v1649_v34  ;;  %1366 = vmatpush.bf16.msrb.mxu1 %v2161_v36 }
  0xb1   :  { %1317 = vmatmul.bf16.vlgmr.msrb.gmra.mxu3 %v2599_v56 }
  0xb2   :  { %1354 = vmatpush.bf16.msrb.mxu0 %v1873_v40 }
  0xb4   :  { %1341 = vmatpush.bf16.msrb.mxu2 %v1617_v46  ;;  %1367 = vmatpush.bf16.msrb.mxu1 %v2129_v48 }
  0xb6   :  { %1355 = vmatpush.bf16.msrb.mxu0 %v1841_v52  ;;  %v1071_v63 = vpop.f32.mrf.mxu0  ;;  %v1099_v4 = vpop.f32.mrf.mxu2 }
  0xb7   :  { %v1072_v1 = vadd.f32 %v1071_v63, %v232_v61 }
  0xb8   :  { %1342 = vmatpush.bf16.msrb.mxu2 %v1585_v58  ;;  %1368 = vmatpush.bf16.msrb.mxu1 %v2097_v59  ;;  %v1084_v0 = vpop.f32.mrf.mxu1 }
  0xb9   :  { %1356 = vmatmul.bf16.vlgmr.msrb.gmra.mxu0 %v2599_v56  ;;  %v1085_v2 = vadd.f32 %v1084_v0, %v1072_v1  ;;  %v1110_v56 = vpop.f32.mrf.mxu3 }
  0xba   :  { %v1111_v7 = vadd.f32 %v1110_v56, %v233_v6 }
  0xbb   :  { %1343 = vmatmul.bf16.vlgmr.msrb.gmra.mxu2 %v2597_v55  ;;  %2201 = vmatmul.msk.bf16.vlgmr.msrb.gmra.mxu1 %vm1058_vm0, %v2593_v28  ;;  %v1098_v3 = vadd.f32 %v1097_v62, %v1085_v2 }
  0xbd   :  { %v2202_v37 = vmul.f32 -1.442695, %v1098_v3 }
  0xbe   :  { %v1073_v5 = vpop.f32.mrf.mxu0 }
  0xbf   :  { %2377 = vpow2.f32 %v2202_v37  ;;  %v239_v37 = vperm.slane %v2637_v60, 7 }
  0xc0   :  { %v1086_v55 = vpop.f32.mrf.mxu1 }
  0xc1   :  { %v1112_v28 = vpop.f32.mrf.mxu3 }
  0xc5   :  { %v2378_v49 = vpop.eup %2377 }
  0xc6   :  { %v1175_v8 = vpop.f32.mrf.mxu0  ;;  %v2647_v54 = vadd.f32 1.0, %v2378_v49 }
  0xc8   :  { %vm1387_vm1 = vweird.f32 %v2647_v54 }
  0xc9   :  { %v1136_v11 = vpop.f32.mrf.mxu3 }
  0xce   :  { %v1123_v9 = vpop.f32.mrf.mxu2  ;;  %v1177_v13 = vpop.f32.mrf.mxu0 }
  0xcf   :  { %v1124_v10 = vadd.f32 %v1123_v9, %v1111_v7 }
  0xd1   :  { %v1137_v12 = vadd.f32 %v1136_v11, %v1124_v10  ;;  %v1138_v16 = vpop.f32.mrf.mxu3 }
  0xd3   :  { %v2203_v50 = vmul.f32 -1.442695, %v1137_v12 }
  0xd6   :  { %v1125_v14 = vpop.f32.mrf.mxu2 }
  0xd7   :  { %v2667_v14 = vld [vmem:[#allocation5] sm:$0xff] }
  0xd8   :  { %v1149_v15 = vpop.f32.mrf.mxu1 }
  0xd9   :  { %v1150_v20 = vadd.f32 %v1149_v15, %v234_v18 }
  0xe0   :  { %v1151_v17 = vpop.f32.mrf.mxu1 }
  0xe4   :  { %v1162_v22 = vpop.f32.mrf.mxu3 }
  0xe5   :  { %v1163_v24 = vadd.f32 %v1162_v22, %v1150_v20  ;;  %v2679_v22 = vld [vmem:[#allocation5 + $0x8] sm:$0xff] }
  0xe6   :  { %v1201_v19 = vpop.f32.mrf.mxu0 }
  0xe7   :  { %v1176_v25 = vadd.f32 %v1175_v8, %v1163_v24 }
  0xe8   :  { %v1214_v21 = vpop.f32.mrf.mxu1 }
  0xe9   :  { %v2204_v44 = vmul.f32 -1.442695, %v1176_v25 }
  0xeb   :  { %2379 = vpow2.f32 %v2204_v44 }
  0xec   :  { %v1164_v30 = vpop.f32.mrf.mxu3 }
  0xee   :  { %v1188_v23 = vpop.f32.mrf.mxu2  ;;  %v1203_v26 = vpop.f32.mrf.mxu0 }
  0xef   :  { %v1189_v35 = vadd.f32 %v1188_v23, %v235_v32 }
  0xf0   :  { %v1216_v27 = vpop.f32.mrf.mxu1 }
  0xf1   :  { %v1202_v38 = vadd.f32 %v1201_v19, %v1189_v35  ;;  %v2380_v59 = vpop.eup %2379  ;;  %v1393_v27 = vand.u32 2147483648, %v2647_v54 }
  0xf2   :  { %v2650_v1 = vadd.f32 1.0, %v2380_v59 }
  0xf3   :  { %v1215_v42 = vadd.f32 %v1214_v21, %v1202_v38  ;;  %v1500_v38 = vpop.permute.xlu0 %1499 }
  0xf4   :  { %vm1425_vm7 = vweird.f32 %v2650_v1 }
  0xf5   :  { %v2205_v46 = vmul.f32 -1.442695, %v1215_v42  ;;  %v1394_v42 = vor.u32 1.1754944e-38, %v1393_v27 }
  0xf6   :  { %v1190_v29 = vpop.f32.mrf.mxu2 }
  0xf7   :  { %2381 = vpow2.f32 %v2205_v46  ;;  %v238_v29 = vperm.slane %v2637_v60, 6 }
  0xf8   :  { %2383 = vpow2.f32 %v2203_v50 }
  0xf9   :  { %2385 = vrcp.f32 %v2647_v54 }
  0xfa   :  { %2387 = vrcp.f32 %v2650_v1 }
  0xfd   :  { %v2382_v63 = vpop.eup %2381 }
  0xfe   :  { %v1253_v31 = vpop.f32.mrf.mxu2  ;;  %v2384_v3 = vpop.eup %2383  ;;  %v2652_v56 = vadd.f32 1.0, %v2382_v63 }
  0xff   :  { %v2654_v6 = vpop.eup %2385  ;;  %v2656_v28 = vadd.f32 1.0, %v2384_v3  ;;  %v1429_v3 = vand.u32 2147483647, %v2650_v1 }
 0x100   :  { %v1383_v9 = vmul.f32 %v2654_v6, %v2647_v54  ;;  %v2663_v10 = vpop.eup %2387  ;;  %vm1388_vm2 = vweird.f32 %v2654_v6  ;;  %vm1440_vm9 = vweird.f32 %v2652_v56 }
 0x101   :  { %v1421_v18 = vmul.f32 %v2663_v10, %v2650_v1  ;;  %vm2695_vm3 = vmor %vm1387_vm1, %vm1388_vm2  ;;  %vm1402_vm4 = vweird.f32 %v2656_v28  ;;  %v1408_v44 = vand.u32 2147483648, %v2656_v28  ;;  %vm1426_vm8 = vweird.f32 %v2663_v10 }
 0x102   :  { %v1384_v12 = vsub.f32 1.0, %v1383_v9  ;;  %vm2733_vm11 = vmor %vm1425_vm7, %vm1426_vm8  ;;  %vm1430_vm13 = vcmp.eq.f32.partialorder %v1429_v3, 8.507059e+37 }
 0x103   :  { %v1422_v26 = vsub.f32 1.0, %v1421_v18 }
 0x104   :  { %v1227_v39 = vpop.f32.mrf.mxu3  ;;  %v1385_v20 = vmul.f32 %v2654_v6, %v1384_v12 }
 0x105   :  { %v1228_v47 = vadd.f32 %v1227_v39, %v236_v43  ;;  %v1423_v39 = vmul.f32 %v2663_v10, %v1422_v26 }
 0x106   :  { %v1266_v33 = vpop.f32.mrf.mxu0  ;;  %v1255_v36 = vpop.f32.mrf.mxu2  ;;  %v2692_v30 = vadd.f32 %v2654_v6, %v1385_v20 }
 0x107   :  { %v1267_v51 = vadd.f32 %v1266_v33, %v237_v45  ;;  %v1391_v33 = vand.u32 2147483647, %v2647_v54  ;;  %v1424_v59 = vadd.f32 %v2663_v10, %v1423_v39 }
 0x108   :  { %v1240_v34 = vpop.f32.mrf.mxu1 }
 0x109   :  { %v1241_v53 = vadd.f32 %v1240_v34, %v1228_v47  ;;  %vm2713_vm6 = vcmp.eq.f32.partialorder %v1391_v33, 8.507059e+37 }
 0x10b   :  { %v1254_v61 = vadd.f32 %v1253_v31, %v1241_v53 }
 0x10c   :  { %v1229_v48 = vpop.f32.mrf.mxu3 }
 0x10d   :  { %v2206_v4 = vmul.f32 -1.442695, %v1254_v61  ;;  %v1431_v61 = vand.u32 2147483648, %v2650_v1  ;;  %v1428_v1 = vsel %vm2733_vm11, %v2663_v10, %v1424_v59  ;;  %v1406_v10 = vand.u32 2147483647, %v2656_v28 }
 0x10e   :  { %v1268_v40 = vpop.f32.mrf.mxu0 }
 0x10f   :  { %2389 = vpow2.f32 %v2206_v4  ;;  %v1432_v12 = vor.u32 1.1754944e-38, %v1431_v61  ;;  %vm1407_vm0 = vcmp.eq.f32.partialorder %v1406_v10, 8.507059e+37 }
 0x110   :  { %v1242_v41 = vpop.f32.mrf.mxu1  ;;  %2391 = vrcp.f32 %v2652_v56 }
 0x111   :  { %v1390_v41 = vsel %vm2695_vm3, %v2654_v6, %v2692_v30 }
 0x114   :  { %v1292_v62 = vpop.f32.mrf.mxu3 }
 0x115   :  { %v2390_v11 = vpop.eup %2389 }
 0x116   :  { %v2645_v52 = vpop.f32.mrf.mxu0  ;;  %v2665_v13 = vpop.eup %2391  ;;  %v2673_v19 = vadd.f32 1.0, %v2390_v11 }
 0x117   :  { %v1436_v21 = vmul.f32 %v2665_v13, %v2652_v56  ;;  %vm1441_vm10 = vweird.f32 %v2665_v13 }
 0x118   :  { %vm2744_vm12 = vmor %vm1440_vm9, %vm1441_vm10  ;;  %vm1463_vm1 = vweird.f32 %v2673_v19 }
 0x119   :  { %v1437_v31 = vsub.f32 1.0, %v1436_v21 }
 0x11b   :  { %v1438_v45 = vmul.f32 %v2665_v13, %v1437_v31  ;;  %v1395_v31 = vsel %vm2713_vm6, %v1394_v42, %v1390_v41  ;;  %v1469_v41 = vand.u32 2147483648, %v2673_v19  ;;  %v1467_v42 = vand.u32 2147483647, %v2673_v19 }
 0x11c   :  { %v1294_v8 = vpop.f32.mrf.mxu3 }
 0x11d   :  { %v1439_v4 = vadd.f32 %v2665_v13, %v1438_v45  ;;  %v1444_v8 = vand.u32 2147483647, %v2652_v56  ;;  %v1470_v47 = vor.u32 1.1754944e-38, %v1469_v41  ;;  %vm1468_vm7 = vcmp.eq.f32.partialorder %v1467_v42, 8.507059e+37 }
 0x11e   :  { %v1279_v57 = vpop.f32.mrf.mxu2  ;;  %v1333_v2 = vpop.f32.mrf.mxu0 }
 0x11f   :  { %v1280_v58 = vadd.f32 %v1279_v57, %v1267_v51  ;;  %v1443_v18 = vsel %vm2744_vm12, %v2665_v13, %v1439_v4  ;;  %vm1445_vm15 = vcmp.eq.f32.partialorder %v1444_v8, 8.507059e+37 }
 0x121   :  { %v1293_v0 = vadd.f32 %v1292_v62, %v1280_v58  ;;  %v1446_v62 = vand.u32 2147483648, %v2652_v56 }
 0x123   :  { %v2207_v5 = vmul.f32 -1.442695, %v1293_v0 }
 0x125   :  { %2393 = vpow2.f32 %v2207_v5 }
 0x126   :  { %v1281_v55 = vpop.f32.mrf.mxu2  ;;  %2395 = vrcp.f32 %v2656_v28 }
 0x127   :  { %2397 = vtanh.f32 %v2667_v14 }
 0x128   :  { %v1305_v7 = vpop.f32.mrf.mxu1  ;;  %2399 = vrcp.f32 %v2673_v19 }
 0x129   :  { %2401 = vtanh.f32 %v2679_v22  ;;  %v1306_v40 = vadd.f32 %v1305_v7, %v238_v29  ;;  %v1409_v29 = vor.u32 1.1754944e-38, %v1408_v44 }
 0x12b   :  { %v2394_v15 = vpop.eup %2393 }
 0x12c   :  { %v2669_v17 = vpop.eup %2395  ;;  %v2681_v23 = vadd.f32 1.0, %v2394_v15  ;;  %v1447_v15 = vor.u32 1.1754944e-38, %v1446_v62 }
 0x12d   :  { %v1398_v25 = vmul.f32 %v2669_v17, %v2656_v28  ;;  %v2398_v34 = vpop.eup %2397  ;;  %vm1403_vm5 = vweird.f32 %v2669_v17 }
 0x12e   :  { %2403 = vrcp.f32 %v2681_v23  ;;  %v2706_v43 = vpop.eup %2399  ;;  %v1495_v60 = vsub.f32 %v2667_v14, %v2398_v34  ;;  %v1502_v51 = vmul.f32 %v2398_v34, %v1500_v38  ;;  %vm2756_vm14 = vmor %vm1402_vm4, %vm1403_vm5  ;;  %v1448_v30 = vsel %vm1445_vm15, %v1447_v15, %v1443_v18 }
 0x12f   :  { %v1399_v35 = vsub.f32 1.0, %v1398_v25  ;;  %v2402_v49 = vpop.eup %2401  ;;  %v1459_v63 = vmul.f32 %v2706_v43, %v2673_v19  ;;  %vm1464_vm2 = vweird.f32 %v2706_v43  ;;  %vm1478_vm5 = vweird.f32 %v2681_v23 }
 0x130   :  { %v1307_v16 = vpop.f32.mrf.mxu1  ;;  %v1496_v5 = vsub.f32 %v2679_v22, %v2402_v49  ;;  %v1503_v9 = vmul.f32 %v2402_v49, %v1500_v38  ;;  %v1504_v20 = vadd.f32 %v1502_v51, %v1495_v60  ;;  %vm1465_vm4 = vmor %vm1463_vm1, %vm1464_vm2  ;;  %v1484_v60 = vand.u32 2147483648, %v2681_v23 }
 0x131   :  { %v1400_v50 = vmul.f32 %v2669_v17, %v1399_v35  ;;  %v1460_v16 = vsub.f32 1.0, %v1459_v63 }
 0x132   :  { %v1505_v26 = vadd.f32 %v1503_v9, %v1496_v5 }
 0x133   :  { %v1401_v11 = vadd.f32 %v2669_v17, %v1400_v50  ;;  %v1461_v28 = vmul.f32 %v2706_v43, %v1460_v16  ;;  %v1485_v50 = vor.u32 1.1754944e-38, %v1484_v60 }
 0x134   :  { %v1318_v46 = vpop.f32.mrf.mxu3  ;;  %v2718_v58 = vpop.eup %2403 }
 0x135   :  { %v1319_v53 = vadd.f32 %v1318_v46, %v1306_v40  ;;  %v1474_v6 = vmul.f32 %v2718_v58, %v2681_v23  ;;  %v1405_v13 = vsel %vm2756_vm14, %v2669_v17, %v1401_v11  ;;  %v1507_v17 = vmul.f32 %v1505_v26, %v1448_v30 }
 0x136   :  { %v1357_v24 = vpop.f32.mrf.mxu0  ;;  %v1410_v35 = vsel %vm1407_vm0, %v1409_v29, %v1405_v13  ;;  %v1462_v39 = vadd.f32 %v2706_v43, %v1461_v28  ;;  %vm1479_vm3 = vweird.f32 %v2718_v58  ;;  %v1482_v46 = vand.u32 2147483647, %v2681_v23 }
 0x137   :  { %v1332_v0 = vadd.f32 %v2645_v52, %v1319_v53  ;;  %v1475_v25 = vsub.f32 1.0, %v1474_v6  ;;  %vm1480_vm6 = vmor %vm1478_vm5, %vm1479_vm3 }
 0x138   :  { %v1370_v36 = vpop.f32.mrf.mxu1  ;;  %v1466_v45 = vsel %vm1465_vm4, %v2706_v43, %v1462_v39  ;;  %vm1483_vm8 = vcmp.eq.f32.partialorder %v1482_v46, 8.507059e+37 }
 0x139   :  { %2405 = vtanh.f32 %v1332_v0  ;;  %v1471_v49 = vsel %vm1468_vm7, %v1470_v47, %v1466_v45 }
 0x13c   :  { %v1320_v56 = vpop.f32.mrf.mxu3 }
 0x13e   :  { %v1344_v48 = vpop.f32.mrf.mxu2  ;;  %v1359_v57 = vpop.f32.mrf.mxu0 }
 0x13f   :  { %v1345_v54 = vadd.f32 %v1344_v48, %v239_v37  ;;  %v2406_v27 = vpop.eup %2405 }
 0x140   :  { %v1372_v7 = vpop.f32.mrf.mxu1  ;;  %v1508_v33 = vmul.f32 %v2406_v27, %v1395_v31 }
 0x141   :  { %v1358_v2 = vadd.f32 %v1357_v24, %v1345_v54  ;;  %v1433_v24 = vsel %vm1430_vm13, %v1432_v12, %v1428_v1 }
 0x142   :  { %v1506_v32 = vmul.f32 %v1504_v20, %v1433_v24 }
 0x143   :  { %v1371_v52 = vadd.f32 %v1370_v36, %v1358_v2  ;;  %v1476_v36 = vmul.f32 %v2718_v58, %v1475_v25 }
 0x144   :  { %v1510_v37 = vadd.f32 %v1508_v33, %v1506_v32 }
 0x145   :  { %2407 = vtanh.f32 %v1371_v52  ;;  %v1477_v44 = vadd.f32 %v2718_v58, %v1476_v36 }
 0x146   :  { %v1346_v21 = vpop.f32.mrf.mxu2  ;;  %2409 = vtanh.f32 %v1510_v37  ;;  %1518 = vst [vmem:[#allocation9] sm:$0xff] %v1510_v37 }
 0x147   :  { %v1481_v19 = vsel %vm1480_vm6, %v2718_v58, %v1477_v44 }
 0x148   :  { %v1486_v53 = vsel %vm1483_vm8, %v1485_v50, %v1481_v19 }
 0x14b   :  { %v2408_v34 = vpop.eup %2407 }
 0x14c   :  { %v1509_v38 = vmul.f32 %v2408_v34, %v1410_v35  ;;  %v2410_v48 = vpop.eup %2409 }
 0x14d   :  { %v1514_v43 = vmul.f32 %v2410_v48, %v1471_v49 }
 0x14e   :  { %v1511_v40 = vadd.f32 %v1509_v38, %v1507_v17 }
 0x14f   :  { %1516 = vst [vmem:[#allocation8] sm:$0xff] %v1514_v43 }
 0x150   :  { %1519 = vst [vmem:[#allocation9 + $0x8] sm:$0xff] %v1511_v40  ;;  %2411 = vtanh.f32 %v1511_v40 }
 0x151   :  { %1541 = dma.vmem_to_hbm [thread:$0]  %s1537_s14, 256, %s1539_s17, [#allocation10]  }
 0x156   :  { %v2412_v51 = vpop.eup %2411 }
 0x157   :  { %v1515_v23 = vmul.f32 %v2412_v51, %v1486_v53 }
 0x159   :  { %1517 = vst [vmem:[#allocation8 + $0x8] sm:$0xff] %v1515_v23 }
 0x15a   :  { %1530 = dma.vmem_to_hbm [thread:$0]  %s1526_s18, 256, %s1528_s21, [#allocation4]  }
 0x15b   :  { %2537 = dma.done.wait [#allocation4], 256  }
 0x15c   :  { %2538 = vsyncadd [#allocation4], 4294967040 }
 0x15d   :  { %2539 = dma.done.wait [#allocation10], 256  }
 0x15e   :  { %2540 = vsyncadd [#allocation10], 4294967040 }
 0x15f   :  { %1550 = vsyncpa [#allocation3], 1 }
 0x160   :  { %1551 = vsyncpa [#allocation6], 1 }
 0x161   :  { %1552 = vsyncpa [#allocation4], 1 }
 0x162   :  { %1553 = vsyncpa [#allocation10], 1 }

</bundles_post_ra>
